<compile_context>
chip_gen: v6e
topology: v6e:2x2x1
jax: 0.10.0
libtpu: 0.0.40
codegen_flags: <defaults>
</compile_context>

<pallas_src>
import numpy as np
import jax
import jax.numpy as jnp
from jax.experimental import pallas as pl
from jax.experimental.pallas import tpu as pltpu

HIDDEN = 64
NUM_LAYERS = 3
INPUT_SIZE = 2

GPAD = 128            # each gate padded to a full 128-lane vreg
GATE_W = 4 * GPAD     # 512 gate lanes per layer
HPAD = 128            # hidden/cell state padded 64 -> 128 lanes


# --------------------------------------------------------------------------- #
# Pallas kernel: full-sequence 3-layer LSTM recurrence + sigmoid head
# --------------------------------------------------------------------------- #
def _pixel_rnn_kernel(xproj_ref, whh0_ref, wf_ref, bf_ref, wout_ref, bout_ref,
                      out_ref, h_ref, c_ref):
    T, B, _ = xproj_ref.shape

    h_ref[...] = jnp.zeros(h_ref.shape, h_ref.dtype)
    c_ref[...] = jnp.zeros(c_ref.shape, c_ref.dtype)

    # Hoist weight reads and bias broadcasts out of the time loop
    # (JAX does not CSE broadcast_in_dim inside the loop body).
    whh0 = whh0_ref[...]                                   # (128, 512) bf16
    wf1 = wf_ref[0]                                        # (256, 512) bf16
    wf2 = wf_ref[1]                                        # (256, 512) bf16
    b1 = jnp.broadcast_to(bf_ref[0], (B, GATE_W))          # (B, 512) f32
    b2 = jnp.broadcast_to(bf_ref[1], (B, GATE_W))          # (B, 512) f32

    def lstm_cell(gates, layer):
        # Gate slices are 128-lane aligned (each gate zero-padded 64 -> 128).
        i_g = jax.nn.sigmoid(gates[:, 0 * GPAD:1 * GPAD])
        f_g = jax.nn.sigmoid(gates[:, 1 * GPAD:2 * GPAD])
        g_g = jnp.tanh(gates[:, 2 * GPAD:3 * GPAD])
        o_g = jax.nn.sigmoid(gates[:, 3 * GPAD:4 * GPAD])
        # Padded lanes: gates==0 there, c starts at 0 -> c/h padded lanes stay 0.
        c_new = f_g * c_ref[layer] + i_g * g_g
        h_new = o_g * jnp.tanh(c_new)
        c_ref[layer] = c_new
        h_ref[layer] = h_new
        return h_new

    def step(t, carry):
        # Layer 0: input projection was precomputed; only the recurrent matmul
        # stays on the serial critical path.
        g0 = xproj_ref[t] + jnp.dot(h_ref[0].astype(jnp.bfloat16), whh0,
                                    preferred_element_type=jnp.float32)
        h0 = lstm_cell(g0, 0)
        # Layers 1-2: one fused K=256 matmul per layer over [h_below | h_this].
        in1 = jnp.concatenate([h0, h_ref[1]], axis=-1).astype(jnp.bfloat16)
        h1 = lstm_cell(jnp.dot(in1, wf1, preferred_element_type=jnp.float32) + b1, 1)
        in2 = jnp.concatenate([h1, h_ref[2]], axis=-1).astype(jnp.bfloat16)
        h2 = lstm_cell(jnp.dot(in2, wf2, preferred_element_type=jnp.float32) + b2, 2)
        out_ref[t] = h2                                    # lane-dense (B, 128) store
        return carry

    jax.lax.fori_loop(0, T, step, 0)

    # Output head: one large lane-dense GEMM over all timesteps, then sigmoid.
    h_all = out_ref[...].reshape(T * B, HPAD).astype(jnp.bfloat16)
    logits = jnp.dot(h_all, wout_ref[...], preferred_element_type=jnp.float32)
    out_ref[...] = jax.nn.sigmoid(logits + bout_ref[...]).reshape(T, B, HPAD)


@jax.jit
def pixel_rnn_forward(sym_f32, packed):
    """sym_f32: (B, T, INPUT_SIZE) float32 -> per-bit prob of symbol==1, same shape."""
    B0, T, F = sym_f32.shape
    Bp = max(8, ((B0 + 7) // 8) * 8)                       # pad batch to f32 sublane tile
    x = jnp.pad(sym_f32, ((0, Bp - B0), (0, 0), (0, 0)))
    x = jnp.transpose(x, (1, 0, 2))                        # (T, Bp, F) time-major

    # Layer-0 input projection is independent of the recurrence: compute once
    # as a batched GEMM (also folds the layer-0 bias).  (T, Bp, 512) f32.
    xproj = jnp.einsum("tbf,fg->tbg", x, packed["wih0"]) + packed["b0"]

    out = pl.pallas_call(
        _pixel_rnn_kernel,
        out_shape=jax.ShapeDtypeStruct((T, Bp, HPAD), jnp.float32),
        grid_spec=pltpu.PrefetchScalarGridSpec(
            num_scalar_prefetch=0,
            grid=(1,),
            in_specs=[
                pl.BlockSpec((T, Bp, GATE_W), lambda i: (0, 0, 0)),      # xproj
                pl.BlockSpec((HPAD, GATE_W), lambda i: (0, 0)),          # W_hh layer 0
                pl.BlockSpec((2, 2 * HPAD, GATE_W), lambda i: (0, 0, 0)),  # fused W layers 1-2
                pl.BlockSpec((2, 1, GATE_W), lambda i: (0, 0, 0)),       # fused biases
                pl.BlockSpec((HPAD, HPAD), lambda i: (0, 0)),            # W_out (padded)
                pl.BlockSpec((1, HPAD), lambda i: (0, 0)),               # b_out (padded)
            ],
            out_specs=pl.BlockSpec((T, Bp, HPAD), lambda i: (0, 0, 0)),
            scratch_shapes=[
                pltpu.VMEM((NUM_LAYERS, Bp, HPAD), jnp.float32),         # h state
                pltpu.VMEM((NUM_LAYERS, Bp, HPAD), jnp.float32),         # c state
            ],
        ),
        compiler_params=pltpu.CompilerParams(dimension_semantics=("arbitrary",)),
    )(xproj, packed["whh0"], packed["wf"], packed["bf"], packed["wout"], packed["bout"])

    out = out[:, :B0, :F]                                  # drop batch / lane padding
    return jnp.transpose(out, (1, 0, 2))                   # (B0, T, F)


# --------------------------------------------------------------------------- #
# Parameter init (standard LSTM layout) + packing into the kernel layout
# --------------------------------------------------------------------------- #
def init_params(key):
    """Deterministic LSTM-style init: U(-1/sqrt(H), 1/sqrt(H))."""
    k = 1.0 / np.sqrt(HIDDEN)
    ks = jax.random.split(key, 3 * NUM_LAYERS + 2)
    p = {}
    in_dims = [INPUT_SIZE, HIDDEN, HIDDEN]
    for l in range(NUM_LAYERS):
        p[f"wih{l}"] = jax.random.uniform(ks[3 * l + 0], (in_dims[l], 4 * HIDDEN),
                                          jnp.float32, -k, k)
        p[f"whh{l}"] = jax.random.uniform(ks[3 * l + 1], (HIDDEN, 4 * HIDDEN),
                                          jnp.float32, -k, k)
        p[f"b{l}"] = jax.random.uniform(ks[3 * l + 2], (4 * HIDDEN,),
                                        jnp.float32, -k, k)
    p["wout"] = jax.random.uniform(ks[-2], (HIDDEN, INPUT_SIZE), jnp.float32, -k, k)
    p["bout"] = jax.random.uniform(ks[-1], (INPUT_SIZE,), jnp.float32, -k, k)
    return p


def _pad_gate_cols(w):
    """(..., 4*HIDDEN) -> (..., 4*GPAD): each 64-wide gate zero-padded to 128 lanes."""
    parts = jnp.split(w, 4, axis=-1)
    pad = [(0, 0)] * (w.ndim - 1) + [(0, GPAD - HIDDEN)]
    return jnp.concatenate([jnp.pad(x, pad) for x in parts], axis=-1)


def pack_params(p):
    # Layer-0 input weights stay f32 in the wrapper (projection precomputed once).
    wih0_p = _pad_gate_cols(p["wih0"])                       # (2, 512)
    b0_p = _pad_gate_cols(p["b0"][None, :])                  # (1, 512)
    # Layer-0 recurrent weight: rows padded 64 -> 128 (padded h lanes are zero).
    whh0_p = jnp.pad(_pad_gate_cols(p["whh0"]), ((0, HPAD - HIDDEN), (0, 0)))
    # Layers 1-2: fused [W_ih ; W_hh] acting on the concatenated padded input
    # [h_below(128) | h_this(128)].
    wfs, bfs = [], []
    for l in (1, 2):
        wih = jnp.pad(_pad_gate_cols(p[f"wih{l}"]), ((0, HPAD - HIDDEN), (0, 0)))
        whh = jnp.pad(_pad_gate_cols(p[f"whh{l}"]), ((0, HPAD - HIDDEN), (0, 0)))
        wfs.append(jnp.concatenate([wih, whh], axis=0))       # (256, 512)
        bfs.append(_pad_gate_cols(p[f"b{l}"][None, :]))       # (1, 512)
    wout_p = jnp.zeros((HPAD, HPAD), jnp.float32).at[:HIDDEN, :INPUT_SIZE].set(p["wout"])
    bout_p = jnp.zeros((1, HPAD), jnp.float32).at[0, :INPUT_SIZE].set(p["bout"])
    return dict(
        wih0=wih0_p,                                          # f32, used in wrapper
        b0=b0_p,                                              # f32, used in wrapper
        whh0=whh0_p.astype(jnp.bfloat16),                     # (128, 512)
        wf=jnp.stack(wfs).astype(jnp.bfloat16),               # (2, 256, 512)
        bf=jnp.stack(bfs),                                    # (2, 1, 512) f32
        wout=wout_p.astype(jnp.bfloat16),                     # (128, 128)
        bout=bout_p,                                          # (1, 128) f32
    )


# --------------------------------------------------------------------------- #
# Host-side glue: Range / arithmetic coder (sequential, data dependent -> CPU)
# --------------------------------------------------------------------------- #
class Range:
    __slots__ = ("low", "high")

    def __init__(self, low, high):
        self.low, self.high = low, high


class AECompressor_RNN:
    """Static binary arithmetic coder (Witten-Neal-Cleary), denominator 4096."""
    PRECISION = 32
    WHOLE = 1 << PRECISION
    HALF = WHOLE >> 1
    QUARTER = WHOLE >> 2
    DENOM = 4096

    def compress(self, symbols, probability):
        low, high, pending = 0, self.WHOLE - 1, 0
        bits = []

        def emit(bit, pend):
            bits.append(bit)
            bits.extend([1 - bit] * pend)
            return 0

        for s, p in zip(symbols, probability):
            r = p[s]
            span = high - low + 1
            high = low + (span * r.high) // self.DENOM - 1
            low = low + (span * r.low) // self.DENOM
            while True:
                if high < self.HALF:
                    pending = emit(0, pending)
                elif low >= self.HALF:
                    pending = emit(1, pending)
                    low -= self.HALF
                    high -= self.HALF
                elif low >= self.QUARTER and high < 3 * self.QUARTER:
                    pending += 1
                    low -= self.QUARTER
                    high -= self.QUARTER
                else:
                    break
                low *= 2
                high = high * 2 + 1
        pending += 1
        if low < self.QUARTER:
            emit(0, pending)
        else:
            emit(1, pending)
        return bits

    def decompress(self, bits, probability):
        def bit_at(i):
            return bits[i] if i < len(bits) else 0

        code = 0
        for i in range(self.PRECISION):
            code = (code << 1) | bit_at(i)
        pos = self.PRECISION
        low, high = 0, self.WHOLE - 1
        out = []
        for p in probability:
            span = high - low + 1
            scaled = ((code - low + 1) * self.DENOM - 1) // span
            s = 1 if (p[1].low <= scaled < p[1].high) else 0
            r = p[s]
            high = low + (span * r.high) // self.DENOM - 1
            low = low + (span * r.low) // self.DENOM
            out.append(s)
            while True:
                if high < self.HALF:
                    pass
                elif low >= self.HALF:
                    code -= self.HALF
                    low -= self.HALF
                    high -= self.HALF
                elif low >= self.QUARTER and high < 3 * self.QUARTER:
                    code -= self.QUARTER
                    low -= self.QUARTER
                    high -= self.QUARTER
                else:
                    break
                low *= 2
                high = high * 2 + 1
                code = code * 2 + bit_at(pos)
                pos += 1
        return out


# --------------------------------------------------------------------------- #
# Module wrapper mirroring RNNConditionalProbabilityModel.forward
# --------------------------------------------------------------------------- #
class RNNConditionalProbabilityModelJAX:
    def __init__(self, bottleneck_dim=32, key=jax.random.PRNGKey(42)):
        self.packed = pack_params(init_params(key))
        self.coder = AECompressor_RNN()

    def process_prob(self, prob):
        prob_list = []
        for i in range(len(prob)):
            prob_scaled = int(prob[i] * 4096)
            # Guard the degenerate zero-width interval (prob ~0 or ~1 would make
            # one symbol's Range empty and break the arithmetic coder).
            prob_scaled = min(max(prob_scaled, 1), 4095)
            p = {1: Range(0, prob_scaled), 0: Range(prob_scaled, 4096)}
            prob_list.append(p)
        return prob_list

    def forward(self, sym):
        sym = jnp.clip(sym, 0, 1)
        input_sym = sym.reshape(-1).astype(jnp.float32)
        output_prob = pixel_rnn_forward(sym.astype(jnp.float32), self.packed)  # Pallas
        output_prob_flat = output_prob.reshape(-1)

        sym_list = [int(v) for v in np.asarray(sym.reshape(-1)).tolist()]
        probability = self.process_prob(np.asarray(output_prob_flat).tolist())
        compressed_sym = self.coder.compress(sym_list, probability)
        decompressed_sym = self.coder.decompress(compressed_sym, probability)
        estimated_bits = jnp.asarray(len(sym_list))
        real_bits = jnp.asarray(len(compressed_sym))
        assert sym_list == decompressed_sym
        return (output_prob_flat[:, None], input_sym[:, None], estimated_bits, real_bits)


if __name__ == "__main__":
    key = jax.random.PRNGKey(0)
    B, T = 2, 8
    sym = jax.random.bernoulli(key, 0.5, (B, T, INPUT_SIZE)).astype(jnp.int32)

    model = RNNConditionalProbabilityModelJAX()
    prob, inp, est_bits, real_bits = model.forward(sym)
    jax.block_until_ready((prob, inp, est_bits, real_bits))

    assert prob.shape == (B * T * INPUT_SIZE, 1)
    assert inp.shape == (B * T * INPUT_SIZE, 1)
    assert bool(jnp.all((prob >= 0.0) & (prob <= 1.0)))
    print("KERNEL_OK")
</pallas_src>

<mosaic_0001>
module attributes {stable_mosaic.version = 11 : i64} {
  func.func @_pixel_rnn_kernel(%arg0: i32, %arg1: memref<8x8x512xf32, #tpu.memory_space<vmem>>, %arg2: memref<128x512xbf16, #tpu.memory_space<vmem>>, %arg3: memref<2x256x512xbf16, #tpu.memory_space<vmem>>, %arg4: memref<2x1x512xf32, #tpu.memory_space<vmem>>, %arg5: memref<128x128xbf16, #tpu.memory_space<vmem>>, %arg6: memref<1x128xf32, #tpu.memory_space<vmem>>, %arg7: memref<8x8x128xf32, #tpu.memory_space<vmem>>, %arg8: memref<3x8x128xf32, #tpu.memory_space<vmem>>, %arg9: memref<3x8x128xf32, #tpu.memory_space<vmem>>) attributes {dimension_semantics = [#tpu.dimension_semantics<arbitrary>], iteration_bounds = array<i64: 1>, scalar_prefetch = 0 : i64, scratch_operands = 2 : i64, tpu.core_type = #tpu.core_type<tc>, window_params = [{pipeline_mode = #tpu.pipeline_mode<synchronous>, transform_indices = @transform_0, window_bounds = array<i64: 8, 8, 512>}, {pipeline_mode = #tpu.pipeline_mode<synchronous>, transform_indices = @transform_1, window_bounds = array<i64: 128, 512>}, {pipeline_mode = #tpu.pipeline_mode<synchronous>, transform_indices = @transform_2, window_bounds = array<i64: 2, 256, 512>}, {pipeline_mode = #tpu.pipeline_mode<synchronous>, transform_indices = @transform_3, window_bounds = array<i64: 2, 1, 512>}, {pipeline_mode = #tpu.pipeline_mode<synchronous>, transform_indices = @transform_4, window_bounds = array<i64: 128, 128>}, {pipeline_mode = #tpu.pipeline_mode<synchronous>, transform_indices = @transform_5, window_bounds = array<i64: 1, 128>}, {pipeline_mode = #tpu.pipeline_mode<synchronous>, transform_indices = @transform_6, window_bounds = array<i64: 8, 8, 128>}]} {
    %cst = arith.constant 0.000000e+00 : f32
    %0 = vector.broadcast %cst : f32 to vector<3x8x128xf32>
    %c0 = arith.constant 0 : index
    %c0_0 = arith.constant 0 : index
    %c0_1 = arith.constant 0 : index
    %1 = vector.load %arg8[%c0, %c0_0, %c0_1] : memref<3x8x128xf32, #tpu.memory_space<vmem>>, vector<3x8x128xf32>
    tpu.vector_store %arg8[%c0, %c0_0, %c0_1], %0 {strides = array<i32>} : memref<3x8x128xf32, #tpu.memory_space<vmem>>, vector<3x8x128xf32>,
    %cst_2 = arith.constant 0.000000e+00 : f32
    %2 = vector.broadcast %cst_2 : f32 to vector<3x8x128xf32>
    %c0_3 = arith.constant 0 : index
    %c0_4 = arith.constant 0 : index
    %c0_5 = arith.constant 0 : index
    %3 = vector.load %arg9[%c0_3, %c0_4, %c0_5] : memref<3x8x128xf32, #tpu.memory_space<vmem>>, vector<3x8x128xf32>
    tpu.vector_store %arg9[%c0_3, %c0_4, %c0_5], %2 {strides = array<i32>} : memref<3x8x128xf32, #tpu.memory_space<vmem>>, vector<3x8x128xf32>,
    %c0_6 = arith.constant 0 : index
    %c0_7 = arith.constant 0 : index
    %4 = vector.load %arg2[%c0_6, %c0_7] : memref<128x512xbf16, #tpu.memory_space<vmem>>, vector<128x512xbf16>
    %c0_8 = arith.constant 0 : index
    %c0_9 = arith.constant 0 : index
    %c0_10 = arith.constant 0 : index
    %5 = vector.load %arg3[%c0_8, %c0_9, %c0_10] : memref<2x256x512xbf16, #tpu.memory_space<vmem>>, vector<1x256x512xbf16>
    %6 = vector.shape_cast %5 : vector<1x256x512xbf16> to vector<256x512xbf16>
    %c1 = arith.constant 1 : index
    %c0_11 = arith.constant 0 : index
    %c0_12 = arith.constant 0 : index
    %7 = vector.load %arg3[%c1, %c0_11, %c0_12] : memref<2x256x512xbf16, #tpu.memory_space<vmem>>, vector<1x256x512xbf16>
    %8 = vector.shape_cast %7 : vector<1x256x512xbf16> to vector<256x512xbf16>
    %c0_13 = arith.constant 0 : index
    %c0_14 = arith.constant 0 : index
    %c0_15 = arith.constant 0 : index
    %9 = vector.load %arg4[%c0_13, %c0_14, %c0_15] : memref<2x1x512xf32, #tpu.memory_space<vmem>>, vector<1x1x512xf32>
    %10 = vector.shape_cast %9 : vector<1x1x512xf32> to vector<1x512xf32>
    %11 = vector.shape_cast %10 : vector<1x512xf32> to vector<1x512xf32>
    %12 = vector.broadcast %11 : vector<1x512xf32> to vector<8x512xf32>
    %c1_16 = arith.constant 1 : index
    %c0_17 = arith.constant 0 : index
    %c0_18 = arith.constant 0 : index
    %13 = vector.load %arg4[%c1_16, %c0_17, %c0_18] : memref<2x1x512xf32, #tpu.memory_space<vmem>>, vector<1x1x512xf32>
    %14 = vector.shape_cast %13 : vector<1x1x512xf32> to vector<1x512xf32>
    %15 = vector.shape_cast %14 : vector<1x512xf32> to vector<1x512xf32>
    %16 = vector.broadcast %15 : vector<1x512xf32> to vector<8x512xf32>
    %c0_i32 = arith.constant 0 : i32
    %c8_i32 = arith.constant 8 : i32
    %17 = arith.addi %c0_i32, %c8_i32 : i32
    %c1_i32 = arith.constant 1 : i32
    scf.for %arg10 = %c0_i32 to %17 step %c1_i32  : i32 {
      %33 = arith.index_cast %arg10 : i32 to index
      %c0_32 = arith.constant 0 : index
      %c0_33 = arith.constant 0 : index
      %34 = vector.load %arg1[%33, %c0_32, %c0_33] : memref<8x8x512xf32, #tpu.memory_space<vmem>>, vector<1x8x512xf32>
      %35 = vector.shape_cast %34 : vector<1x8x512xf32> to vector<8x512xf32>
      %c0_34 = arith.constant 0 : index
      %c0_35 = arith.constant 0 : index
      %c0_36 = arith.constant 0 : index
      %36 = vector.load %arg8[%c0_34, %c0_35, %c0_36] : memref<3x8x128xf32, #tpu.memory_space<vmem>>, vector<1x8x128xf32>
      %37 = vector.shape_cast %36 : vector<1x8x128xf32> to vector<8x128xf32>
      %38 = arith.truncf %37 : vector<8x128xf32> to vector<8x128xbf16>
      %cst_37 = arith.constant dense<0.000000e+00> : vector<8x512xf32>
      %39 = tpu.matmul %38, %4, %cst_37 {dimension_numbers = #tpu.dot_dimension_numbers<[1], [0], [0], [1], [0, 0, 1, 1], [], []>} : vector<8x128xbf16>, vector<128x512xbf16>, vector<8x512xf32> -> vector<8x512xf32>
      %40 = arith.addf %35, %39 : vector<8x512xf32>
      %41 = vector.extract_strided_slice %40 {offsets = [0, 0], sizes = [8, 128], strides = [1, 1]} : vector<8x512xf32> to vector<8x128xf32>
      %42 = arith.negf %41 : vector<8x128xf32>
      %43 = math.exp %42 : vector<8x128xf32>
      %cst_38 = arith.constant 1.000000e+00 : f32
      %44 = vector.broadcast %cst_38 : f32 to vector<8x128xf32>
      %45 = arith.addf %44, %43 : vector<8x128xf32>
      %46 = arith.divf %44, %45 : vector<8x128xf32>
      %47 = vector.extract_strided_slice %40 {offsets = [0, 128], sizes = [8, 128], strides = [1, 1]} : vector<8x512xf32> to vector<8x128xf32>
      %48 = arith.negf %47 : vector<8x128xf32>
      %49 = math.exp %48 : vector<8x128xf32>
      %cst_39 = arith.constant 1.000000e+00 : f32
      %50 = vector.broadcast %cst_39 : f32 to vector<8x128xf32>
      %51 = arith.addf %50, %49 : vector<8x128xf32>
      %52 = arith.divf %50, %51 : vector<8x128xf32>
      %53 = vector.extract_strided_slice %40 {offsets = [0, 256], sizes = [8, 128], strides = [1, 1]} : vector<8x512xf32> to vector<8x128xf32>
      %54 = math.tanh %53 : vector<8x128xf32>
      %55 = vector.extract_strided_slice %40 {offsets = [0, 384], sizes = [8, 128], strides = [1, 1]} : vector<8x512xf32> to vector<8x128xf32>
      %56 = arith.negf %55 : vector<8x128xf32>
      %57 = math.exp %56 : vector<8x128xf32>
      %cst_40 = arith.constant 1.000000e+00 : f32
      %58 = vector.broadcast %cst_40 : f32 to vector<8x128xf32>
      %59 = arith.addf %58, %57 : vector<8x128xf32>
      %60 = arith.divf %58, %59 : vector<8x128xf32>
      %c0_41 = arith.constant 0 : index
      %c0_42 = arith.constant 0 : index
      %c0_43 = arith.constant 0 : index
      %61 = vector.load %arg9[%c0_41, %c0_42, %c0_43] : memref<3x8x128xf32, #tpu.memory_space<vmem>>, vector<1x8x128xf32>
      %62 = vector.shape_cast %61 : vector<1x8x128xf32> to vector<8x128xf32>
      %63 = arith.mulf %52, %62 : vector<8x128xf32>
      %64 = arith.mulf %46, %54 : vector<8x128xf32>
      %65 = arith.addf %63, %64 : vector<8x128xf32>
      %66 = math.tanh %65 : vector<8x128xf32>
      %67 = arith.mulf %60, %66 : vector<8x128xf32>
      %c0_44 = arith.constant 0 : index
      %c0_45 = arith.constant 0 : index
      %c0_46 = arith.constant 0 : index
      %68 = vector.load %arg9[%c0_44, %c0_45, %c0_46] : memref<3x8x128xf32, #tpu.memory_space<vmem>>, vector<1x8x128xf32>
      %69 = vector.shape_cast %68 : vector<1x8x128xf32> to vector<8x128xf32>
      %70 = vector.shape_cast %65 : vector<8x128xf32> to vector<1x8x128xf32>
      tpu.vector_store %arg9[%c0_44, %c0_45, %c0_46], %70 {strides = array<i32>} : memref<3x8x128xf32, #tpu.memory_space<vmem>>, vector<1x8x128xf32>,
      %c0_47 = arith.constant 0 : index
      %c0_48 = arith.constant 0 : index
      %c0_49 = arith.constant 0 : index
      %71 = vector.load %arg8[%c0_47, %c0_48, %c0_49] : memref<3x8x128xf32, #tpu.memory_space<vmem>>, vector<1x8x128xf32>
      %72 = vector.shape_cast %71 : vector<1x8x128xf32> to vector<8x128xf32>
      %73 = vector.shape_cast %67 : vector<8x128xf32> to vector<1x8x128xf32>
      tpu.vector_store %arg8[%c0_47, %c0_48, %c0_49], %73 {strides = array<i32>} : memref<3x8x128xf32, #tpu.memory_space<vmem>>, vector<1x8x128xf32>,
      %c1_50 = arith.constant 1 : index
      %c0_51 = arith.constant 0 : index
      %c0_52 = arith.constant 0 : index
      %74 = vector.load %arg8[%c1_50, %c0_51, %c0_52] : memref<3x8x128xf32, #tpu.memory_space<vmem>>, vector<1x8x128xf32>
      %75 = vector.shape_cast %74 : vector<1x8x128xf32> to vector<8x128xf32>
      %76 = tpu.concatenate %67, %75 in 1 : vector<8x128xf32>, vector<8x128xf32> -> vector<8x256xf32>
      %77 = arith.truncf %76 : vector<8x256xf32> to vector<8x256xbf16>
      %cst_53 = arith.constant dense<0.000000e+00> : vector<8x512xf32>
      %78 = tpu.matmul %77, %6, %cst_53 {dimension_numbers = #tpu.dot_dimension_numbers<[1], [0], [0], [1], [0, 0, 1, 1], [], []>} : vector<8x256xbf16>, vector<256x512xbf16>, vector<8x512xf32> -> vector<8x512xf32>
      %79 = arith.addf %78, %12 : vector<8x512xf32>
      %80 = vector.extract_strided_slice %79 {offsets = [0, 0], sizes = [8, 128], strides = [1, 1]} : vector<8x512xf32> to vector<8x128xf32>
      %81 = arith.negf %80 : vector<8x128xf32>
      %82 = math.exp %81 : vector<8x128xf32>
      %cst_54 = arith.constant 1.000000e+00 : f32
      %83 = vector.broadcast %cst_54 : f32 to vector<8x128xf32>
      %84 = arith.addf %83, %82 : vector<8x128xf32>
      %85 = arith.divf %83, %84 : vector<8x128xf32>
      %86 = vector.extract_strided_slice %79 {offsets = [0, 128], sizes = [8, 128], strides = [1, 1]} : vector<8x512xf32> to vector<8x128xf32>
      %87 = arith.negf %86 : vector<8x128xf32>
      %88 = math.exp %87 : vector<8x128xf32>
      %cst_55 = arith.constant 1.000000e+00 : f32
      %89 = vector.broadcast %cst_55 : f32 to vector<8x128xf32>
      %90 = arith.addf %89, %88 : vector<8x128xf32>
      %91 = arith.divf %89, %90 : vector<8x128xf32>
      %92 = vector.extract_strided_slice %79 {offsets = [0, 256], sizes = [8, 128], strides = [1, 1]} : vector<8x512xf32> to vector<8x128xf32>
      %93 = math.tanh %92 : vector<8x128xf32>
      %94 = vector.extract_strided_slice %79 {offsets = [0, 384], sizes = [8, 128], strides = [1, 1]} : vector<8x512xf32> to vector<8x128xf32>
      %95 = arith.negf %94 : vector<8x128xf32>
      %96 = math.exp %95 : vector<8x128xf32>
      %cst_56 = arith.constant 1.000000e+00 : f32
      %97 = vector.broadcast %cst_56 : f32 to vector<8x128xf32>
      %98 = arith.addf %97, %96 : vector<8x128xf32>
      %99 = arith.divf %97, %98 : vector<8x128xf32>
      %c1_57 = arith.constant 1 : index
      %c0_58 = arith.constant 0 : index
      %c0_59 = arith.constant 0 : index
      %100 = vector.load %arg9[%c1_57, %c0_58, %c0_59] : memref<3x8x128xf32, #tpu.memory_space<vmem>>, vector<1x8x128xf32>
      %101 = vector.shape_cast %100 : vector<1x8x128xf32> to vector<8x128xf32>
      %102 = arith.mulf %91, %101 : vector<8x128xf32>
      %103 = arith.mulf %85, %93 : vector<8x128xf32>
      %104 = arith.addf %102, %103 : vector<8x128xf32>
      %105 = math.tanh %104 : vector<8x128xf32>
      %106 = arith.mulf %99, %105 : vector<8x128xf32>
      %c1_60 = arith.constant 1 : index
      %c0_61 = arith.constant 0 : index
      %c0_62 = arith.constant 0 : index
      %107 = vector.load %arg9[%c1_60, %c0_61, %c0_62] : memref<3x8x128xf32, #tpu.memory_space<vmem>>, vector<1x8x128xf32>
      %108 = vector.shape_cast %107 : vector<1x8x128xf32> to vector<8x128xf32>
      %109 = vector.shape_cast %104 : vector<8x128xf32> to vector<1x8x128xf32>
      tpu.vector_store %arg9[%c1_60, %c0_61, %c0_62], %109 {strides = array<i32>} : memref<3x8x128xf32, #tpu.memory_space<vmem>>, vector<1x8x128xf32>,
      %c1_63 = arith.constant 1 : index
      %c0_64 = arith.constant 0 : index
      %c0_65 = arith.constant 0 : index
      %110 = vector.load %arg8[%c1_63, %c0_64, %c0_65] : memref<3x8x128xf32, #tpu.memory_space<vmem>>, vector<1x8x128xf32>
      %111 = vector.shape_cast %110 : vector<1x8x128xf32> to vector<8x128xf32>
      %112 = vector.shape_cast %106 : vector<8x128xf32> to vector<1x8x128xf32>
      tpu.vector_store %arg8[%c1_63, %c0_64, %c0_65], %112 {strides = array<i32>} : memref<3x8x128xf32, #tpu.memory_space<vmem>>, vector<1x8x128xf32>,
      %c2 = arith.constant 2 : index
      %c0_66 = arith.constant 0 : index
      %c0_67 = arith.constant 0 : index
      %113 = vector.load %arg8[%c2, %c0_66, %c0_67] : memref<3x8x128xf32, #tpu.memory_space<vmem>>, vector<1x8x128xf32>
      %114 = vector.shape_cast %113 : vector<1x8x128xf32> to vector<8x128xf32>
      %115 = tpu.concatenate %106, %114 in 1 : vector<8x128xf32>, vector<8x128xf32> -> vector<8x256xf32>
      %116 = arith.truncf %115 : vector<8x256xf32> to vector<8x256xbf16>
      %cst_68 = arith.constant dense<0.000000e+00> : vector<8x512xf32>
      %117 = tpu.matmul %116, %8, %cst_68 {dimension_numbers = #tpu.dot_dimension_numbers<[1], [0], [0], [1], [0, 0, 1, 1], [], []>} : vector<8x256xbf16>, vector<256x512xbf16>, vector<8x512xf32> -> vector<8x512xf32>
      %118 = arith.addf %117, %16 : vector<8x512xf32>
      %119 = vector.extract_strided_slice %118 {offsets = [0, 0], sizes = [8, 128], strides = [1, 1]} : vector<8x512xf32> to vector<8x128xf32>
      %120 = arith.negf %119 : vector<8x128xf32>
      %121 = math.exp %120 : vector<8x128xf32>
      %cst_69 = arith.constant 1.000000e+00 : f32
      %122 = vector.broadcast %cst_69 : f32 to vector<8x128xf32>
      %123 = arith.addf %122, %121 : vector<8x128xf32>
      %124 = arith.divf %122, %123 : vector<8x128xf32>
      %125 = vector.extract_strided_slice %118 {offsets = [0, 128], sizes = [8, 128], strides = [1, 1]} : vector<8x512xf32> to vector<8x128xf32>
      %126 = arith.negf %125 : vector<8x128xf32>
      %127 = math.exp %126 : vector<8x128xf32>
      %cst_70 = arith.constant 1.000000e+00 : f32
      %128 = vector.broadcast %cst_70 : f32 to vector<8x128xf32>
      %129 = arith.addf %128, %127 : vector<8x128xf32>
      %130 = arith.divf %128, %129 : vector<8x128xf32>
      %131 = vector.extract_strided_slice %118 {offsets = [0, 256], sizes = [8, 128], strides = [1, 1]} : vector<8x512xf32> to vector<8x128xf32>
      %132 = math.tanh %131 : vector<8x128xf32>
      %133 = vector.extract_strided_slice %118 {offsets = [0, 384], sizes = [8, 128], strides = [1, 1]} : vector<8x512xf32> to vector<8x128xf32>
      %134 = arith.negf %133 : vector<8x128xf32>
      %135 = math.exp %134 : vector<8x128xf32>
      %cst_71 = arith.constant 1.000000e+00 : f32
      %136 = vector.broadcast %cst_71 : f32 to vector<8x128xf32>
      %137 = arith.addf %136, %135 : vector<8x128xf32>
      %138 = arith.divf %136, %137 : vector<8x128xf32>
      %c2_72 = arith.constant 2 : index
      %c0_73 = arith.constant 0 : index
      %c0_74 = arith.constant 0 : index
      %139 = vector.load %arg9[%c2_72, %c0_73, %c0_74] : memref<3x8x128xf32, #tpu.memory_space<vmem>>, vector<1x8x128xf32>
      %140 = vector.shape_cast %139 : vector<1x8x128xf32> to vector<8x128xf32>
      %141 = arith.mulf %130, %140 : vector<8x128xf32>
      %142 = arith.mulf %124, %132 : vector<8x128xf32>
      %143 = arith.addf %141, %142 : vector<8x128xf32>
      %144 = math.tanh %143 : vector<8x128xf32>
      %145 = arith.mulf %138, %144 : vector<8x128xf32>
      %c2_75 = arith.constant 2 : index
      %c0_76 = arith.constant 0 : index
      %c0_77 = arith.constant 0 : index
      %146 = vector.load %arg9[%c2_75, %c0_76, %c0_77] : memref<3x8x128xf32, #tpu.memory_space<vmem>>, vector<1x8x128xf32>
      %147 = vector.shape_cast %146 : vector<1x8x128xf32> to vector<8x128xf32>
      %148 = vector.shape_cast %143 : vector<8x128xf32> to vector<1x8x128xf32>
      tpu.vector_store %arg9[%c2_75, %c0_76, %c0_77], %148 {strides = array<i32>} : memref<3x8x128xf32, #tpu.memory_space<vmem>>, vector<1x8x128xf32>,
      %c2_78 = arith.constant 2 : index
      %c0_79 = arith.constant 0 : index
      %c0_80 = arith.constant 0 : index
      %149 = vector.load %arg8[%c2_78, %c0_79, %c0_80] : memref<3x8x128xf32, #tpu.memory_space<vmem>>, vector<1x8x128xf32>
      %150 = vector.shape_cast %149 : vector<1x8x128xf32> to vector<8x128xf32>
      %151 = vector.shape_cast %145 : vector<8x128xf32> to vector<1x8x128xf32>
      tpu.vector_store %arg8[%c2_78, %c0_79, %c0_80], %151 {strides = array<i32>} : memref<3x8x128xf32, #tpu.memory_space<vmem>>, vector<1x8x128xf32>,
      %152 = arith.index_cast %arg10 : i32 to index
      %c0_81 = arith.constant 0 : index
      %c0_82 = arith.constant 0 : index
      %153 = vector.load %arg7[%152, %c0_81, %c0_82] : memref<8x8x128xf32, #tpu.memory_space<vmem>>, vector<1x8x128xf32>
      %154 = vector.shape_cast %153 : vector<1x8x128xf32> to vector<8x128xf32>
      %155 = vector.shape_cast %145 : vector<8x128xf32> to vector<1x8x128xf32>
      tpu.vector_store %arg7[%152, %c0_81, %c0_82], %155 {strides = array<i32>} : memref<8x8x128xf32, #tpu.memory_space<vmem>>, vector<1x8x128xf32>,
    }
    %c8_i32_19 = arith.constant 8 : i32
    %c0_20 = arith.constant 0 : index
    %c0_21 = arith.constant 0 : index
    %c0_22 = arith.constant 0 : index
    %18 = vector.load %arg7[%c0_20, %c0_21, %c0_22] : memref<8x8x128xf32, #tpu.memory_space<vmem>>, vector<8x8x128xf32>
    %19 = vector.shape_cast %18 : vector<8x8x128xf32> to vector<64x128xf32>
    %20 = arith.truncf %19 : vector<64x128xf32> to vector<64x128xbf16>
    %c0_23 = arith.constant 0 : index
    %c0_24 = arith.constant 0 : index
    %21 = vector.load %arg5[%c0_23, %c0_24] : memref<128x128xbf16, #tpu.memory_space<vmem>>, vector<128x128xbf16>
    %cst_25 = arith.constant dense<0.000000e+00> : vector<64x128xf32>
    %22 = tpu.matmul %20, %21, %cst_25 {dimension_numbers = #tpu.dot_dimension_numbers<[1], [0], [0], [1], [0, 0, 1, 1], [], []>} : vector<64x128xbf16>, vector<128x128xbf16>, vector<64x128xf32> -> vector<64x128xf32>
    %c0_26 = arith.constant 0 : index
    %c0_27 = arith.constant 0 : index
    %23 = vector.load %arg6[%c0_26, %c0_27] : memref<1x128xf32, #tpu.memory_space<vmem>>, vector<1x128xf32>
    %24 = vector.broadcast %23 : vector<1x128xf32> to vector<64x128xf32>
    %25 = arith.addf %22, %24 : vector<64x128xf32>
    %26 = arith.negf %25 : vector<64x128xf32>
    %27 = math.exp %26 : vector<64x128xf32>
    %cst_28 = arith.constant 1.000000e+00 : f32
    %28 = vector.broadcast %cst_28 : f32 to vector<64x128xf32>
    %29 = arith.addf %28, %27 : vector<64x128xf32>
    %30 = arith.divf %28, %29 : vector<64x128xf32>
    %31 = vector.shape_cast %30 : vector<64x128xf32> to vector<8x8x128xf32>
    %c0_29 = arith.constant 0 : index
    %c0_30 = arith.constant 0 : index
    %c0_31 = arith.constant 0 : index
    %32 = vector.load %arg7[%c0_29, %c0_30, %c0_31] : memref<8x8x128xf32, #tpu.memory_space<vmem>>, vector<8x8x128xf32>
    tpu.vector_store %arg7[%c0_29, %c0_30, %c0_31], %31 {strides = array<i32>} : memref<8x8x128xf32, #tpu.memory_space<vmem>>, vector<8x8x128xf32>,
    return
  }
  func.func @transform_0(%arg0: i32) -> (i32, i32, i32) {
    %c0_i32 = arith.constant 0 : i32
    %c0_i32_0 = arith.constant 0 : i32
    %c0_i32_1 = arith.constant 0 : i32
    %c0_i32_2 = arith.constant 0 : i32
    return %c0_i32, %c0_i32_0, %c0_i32_1 : i32, i32, i32
  }
  func.func @transform_1(%arg0: i32) -> (i32, i32) {
    %c0_i32 = arith.constant 0 : i32
    %c0_i32_0 = arith.constant 0 : i32
    %c0_i32_1 = arith.constant 0 : i32
    return %c0_i32, %c0_i32_0 : i32, i32
  }
  func.func @transform_2(%arg0: i32) -> (i32, i32, i32) {
    %c0_i32 = arith.constant 0 : i32
    %c0_i32_0 = arith.constant 0 : i32
    %c0_i32_1 = arith.constant 0 : i32
    %c0_i32_2 = arith.constant 0 : i32
    return %c0_i32, %c0_i32_0, %c0_i32_1 : i32, i32, i32
  }
  func.func @transform_3(%arg0: i32) -> (i32, i32, i32) {
    %c0_i32 = arith.constant 0 : i32
    %c0_i32_0 = arith.constant 0 : i32
    %c0_i32_1 = arith.constant 0 : i32
    %c0_i32_2 = arith.constant 0 : i32
    return %c0_i32, %c0_i32_0, %c0_i32_1 : i32, i32, i32
  }
  func.func @transform_4(%arg0: i32) -> (i32, i32) {
    %c0_i32 = arith.constant 0 : i32
    %c0_i32_0 = arith.constant 0 : i32
    %c0_i32_1 = arith.constant 0 : i32
    return %c0_i32, %c0_i32_0 : i32, i32
  }
  func.func @transform_5(%arg0: i32) -> (i32, i32) {
    %c0_i32 = arith.constant 0 : i32
    %c0_i32_0 = arith.constant 0 : i32
    %c0_i32_1 = arith.constant 0 : i32
    return %c0_i32, %c0_i32_0 : i32, i32
  }
  func.func @transform_6(%arg0: i32) -> (i32, i32, i32) {
    %c0_i32 = arith.constant 0 : i32
    %c0_i32_0 = arith.constant 0 : i32
    %c0_i32_1 = arith.constant 0 : i32
    %c0_i32_2 = arith.constant 0 : i32
    return %c0_i32, %c0_i32_0, %c0_i32_1 : i32, i32, i32
  }
}

</mosaic_0001>

<bundles_post_ra>
// kernel: pixel_rnn_forward.1
= control target key start
LH: loop header
LB: loop body
LE: loop exit
PB: predicated region body
PF: predicated region fallthrough
CT: control target
= control target key end

     0   :  { %11 = vsyncpa [#allocation5], 0  ;;  %s2923_s0 = inlined_call_operand.vmem [shape: f32[8,8,512], index: 0, kind: input, shape index: {}]   ;;  %s2924_s1 = inlined_call_operand.vmem [shape: bf16[128,512], index: 1, kind: input, shape index: {}]   ;;  %s2925_s2 = inlined_call_operand.hbm [shape: bf16[2,256,512], index: 2, kind: input, shape index: {}]   ;;  %s2926_s3 = inlined_call_operand.vmem [shape: f32[2,1,512], index: 3, kind: input, shape index: {}]   ;;  %s2927_s4 = inlined_call_operand.hbm [shape: bf16[128,128], index: 4, kind: input, shape index: {}]   ;;  %s2928_s5 = inlined_call_operand.vmem [shape: f32[1,128], index: 5, kind: input, shape index: {}]   ;;  %s2929_s6 = inlined_call_operand.vmem [shape: f32[8,8,128], index: 6, kind: output, shape index: {}]  }
   0x1   :  { %12 = vsyncpa [#allocation7], 0  ;;  %s2041_s21 = smov [#allocation4]  }
   0x2   :  { %s22_s22 = sshll.u32 %s2041_s21, 4  ;;  %s23_s22 = int_to_ptr.vmem [resolvable:$true] %s22_s22 }
   0x3   :  { %s1997_s23 = scalar_lea.vmem %s23_s22, 16384  ;;  %p2002_p1 = scmp.lt.s32.totalorder %s23_s22, %s23_s22 }
   0x4   :  { %p1998_p0 = scmp.ne.s32.totalorder %s23_s22, %s1997_s23  ;;  %p2003_p2 = scmp.lt.s32.totalorder %s1997_s23, %s1997_s23 }
   0x6   :  { %p2004_p3 = por %p2003_p2, %p2002_p1 }
   0x8   :  { %p2005_p4 = pnand %p2004_p3, %p1998_p0 }
   0xa   :  { %2008 = shalt.err (!%p2005_p4)
}
   0xb   :  { %s2042_s24 = smov 256   ;;  %s2043_s25 = smov 16  }
   0xc   :  { %28 = dma.hbm_to_vmem [thread:$0]  %s2925_s2, 16384, %s23_s22, [#allocation5], %s2042_s24, %s2042_s24, %s2043_s25  }
   0xd   :  { %s2044_s28 = smov [#allocation6]  }
   0xe   :  { %s36_s29 = sshll.u32 %s2044_s28, 4  ;;  %s37_s29 = int_to_ptr.vmem [resolvable:$true] %s36_s29 }
   0xf   :  { %s2017_s30 = scalar_lea.vmem %s37_s29, 1024  ;;  %p2022_p6 = scmp.lt.s32.totalorder %s37_s29, %s37_s29 }
  0x10   :  { %p2018_p5 = scmp.ne.s32.totalorder %s37_s29, %s2017_s30  ;;  %p2023_p7 = scmp.lt.s32.totalorder %s2017_s30, %s2017_s30 }
  0x12   :  { %p2024_p8 = por %p2023_p7, %p2022_p6 }
  0x14   :  { %p2025_p9 = pnand %p2024_p8, %p2018_p5 }
  0x16   :  { %2028 = shalt.err (!%p2025_p9)
}
  0x17   :  { %s2045_s7 = smov 64   ;;  %s2046_s8 = smov 4  }
  0x18   :  { %42 = dma.hbm_to_vmem [thread:$0]  %s2927_s4, 1024, %s37_s29, [#allocation7], %s2045_s7, %s2045_s7, %s2046_s8  }
  0x19   :  { %2033 = dma.done.wait [#allocation5], 16384  }
  0x1a   :  { %2034 = vsyncadd [#allocation5], 4294950912 }
  0x1b   :  { %2035 = dma.done.wait [#allocation7], 1024  }
  0x1c   :  { %2036 = vsyncadd [#allocation7], 4294966272  ;;  %v2047_v0 = vmov 0.0   ;;  %v2093_v1 = vld [vmem:[%s2924_s1] sm:$0xff]  ;;  %v2098_v2 = vld [vmem:[%s2924_s1 + $0x8] sm:$0xff]  ;;  %s2528_s24 = smov 0  }
  0x1d   :  { %52 = vst [vmem:[#allocation2 + $0x10] sm:$0xff] %v2047_v0  ;;  %53 = vst [vmem:[#allocation2] sm:$0xff] %v2047_v0  ;;  %v2103_v3 = vld [vmem:[%s2924_s1 + $0x10] sm:$0xff]  ;;  %v2108_v4 = vld [vmem:[%s2924_s1 + $0x18] sm:$0xff] }
  0x1e   :  { %54 = vst [vmem:[#allocation2 + $0x8] sm:$0xff] %v2047_v0  ;;  %55 = vst [vmem:[#allocation3 + $0x8] sm:$0xff] %v2047_v0  ;;  %v2113_v5 = vld [vmem:[%s2924_s1 + $0x20] sm:$0xff]  ;;  %v2118_v6 = vld [vmem:[%s2924_s1 + $0x28] sm:$0xff] }
  0x1f   :  { %56 = vst [vmem:[#allocation3] sm:$0xff] %v2047_v0  ;;  %57 = vst [vmem:[#allocation3 + $0x10] sm:$0xff] %v2047_v0  ;;  %v2123_v7 = vld [vmem:[%s2924_s1 + $0x30] sm:$0xff]  ;;  %v2128_v8 = vld [vmem:[%s2924_s1 + $0x38] sm:$0xff] }
  0x20   :  { %3161 = vst [vmem:[#allocation10_spill] sm:$0xff] %v2093_v1  ;;  %3162 = vst [vmem:[#allocation11_spill] sm:$0xff] %v2098_v2  ;;  %v2133_v9 = vld [vmem:[%s2924_s1 + $0x40] sm:$0xff]  ;;  %v2138_v10 = vld [vmem:[%s2924_s1 + $0x48] sm:$0xff] }
  0x21   :  { %3163 = vst [vmem:[#allocation12_spill] sm:$0xff] %v2103_v3  ;;  %3164 = vst [vmem:[#allocation13_spill] sm:$0xff] %v2108_v4  ;;  %v2143_v11 = vld [vmem:[%s2924_s1 + $0x50] sm:$0xff]  ;;  %v2148_v12 = vld [vmem:[%s2924_s1 + $0x58] sm:$0xff] }
  0x22   :  { %3165 = vst [vmem:[#allocation14_spill] sm:$0xff] %v2113_v5  ;;  %3166 = vst [vmem:[#allocation15_spill] sm:$0xff] %v2118_v6  ;;  %v2153_v13 = vld [vmem:[%s2924_s1 + $0x60] sm:$0xff]  ;;  %v2158_v14 = vld [vmem:[%s2924_s1 + $0x68] sm:$0xff] }
  0x23   :  { %3167 = vst [vmem:[#allocation16_spill] sm:$0xff] %v2123_v7  ;;  %3168 = vst [vmem:[#allocation17_spill] sm:$0xff] %v2128_v8  ;;  %v2163_v15 = vld [vmem:[%s2924_s1 + $0x70] sm:$0xff]  ;;  %v2168_v16 = vld [vmem:[%s2924_s1 + $0x78] sm:$0xff] }
  0x24   :  { %3169 = vst [vmem:[#allocation18_spill] sm:$0xff] %v2133_v9  ;;  %3170 = vst [vmem:[#allocation19_spill] sm:$0xff] %v2138_v10  ;;  %v2173_v17 = vld [vmem:[%s2924_s1 + $0x80] sm:$0xff]  ;;  %v2178_v18 = vld [vmem:[%s2924_s1 + $0x88] sm:$0xff] }
  0x25   :  { %3171 = vst [vmem:[#allocation20_spill] sm:$0xff] %v2143_v11  ;;  %3172 = vst [vmem:[#allocation21_spill] sm:$0xff] %v2148_v12  ;;  %v2183_v19 = vld [vmem:[%s2924_s1 + $0x90] sm:$0xff]  ;;  %v2188_v20 = vld [vmem:[%s2924_s1 + $0x98] sm:$0xff] }
  0x26   :  { %3173 = vst [vmem:[#allocation22_spill] sm:$0xff] %v2153_v13  ;;  %3174 = vst [vmem:[#allocation23_spill] sm:$0xff] %v2158_v14  ;;  %v2193_v21 = vld [vmem:[%s2924_s1 + $0xa0] sm:$0xff]  ;;  %v2198_v22 = vld [vmem:[%s2924_s1 + $0xa8] sm:$0xff] }
  0x27   :  { %3175 = vst [vmem:[#allocation24_spill] sm:$0xff] %v2163_v15  ;;  %3176 = vst [vmem:[#allocation25_spill] sm:$0xff] %v2168_v16  ;;  %v2203_v23 = vld [vmem:[%s2924_s1 + $0xb0] sm:$0xff]  ;;  %v2208_v24 = vld [vmem:[%s2924_s1 + $0xb8] sm:$0xff] }
  0x28   :  { %3177 = vst [vmem:[#allocation26_spill] sm:$0xff] %v2173_v17  ;;  %3178 = vst [vmem:[#allocation27_spill] sm:$0xff] %v2178_v18  ;;  %v2213_v25 = vld [vmem:[%s2924_s1 + $0xc0] sm:$0xff]  ;;  %v2218_v26 = vld [vmem:[%s2924_s1 + $0xc8] sm:$0xff] }
  0x29   :  { %3179 = vst [vmem:[#allocation28_spill] sm:$0xff] %v2183_v19  ;;  %3180 = vst [vmem:[#allocation29_spill] sm:$0xff] %v2188_v20  ;;  %v2223_v27 = vld [vmem:[%s2924_s1 + $0xd0] sm:$0xff]  ;;  %v2228_v28 = vld [vmem:[%s2924_s1 + $0xd8] sm:$0xff] }
  0x2a   :  { %3181 = vst [vmem:[#allocation30_spill] sm:$0xff] %v2193_v21  ;;  %3182 = vst [vmem:[#allocation31_spill] sm:$0xff] %v2198_v22  ;;  %v2233_v29 = vld [vmem:[%s2924_s1 + $0xe0] sm:$0xff]  ;;  %v2238_v30 = vld [vmem:[%s2924_s1 + $0xe8] sm:$0xff] }
  0x2b   :  { %3183 = vst [vmem:[#allocation32_spill] sm:$0xff] %v2203_v23  ;;  %3184 = vst [vmem:[#allocation33_spill] sm:$0xff] %v2208_v24  ;;  %v2243_v31 = vld [vmem:[%s2924_s1 + $0xf0] sm:$0xff]  ;;  %v2248_v32 = vld [vmem:[%s2924_s1 + $0xf8] sm:$0xff] }
  0x2c   :  { %3185 = vst [vmem:[#allocation34_spill] sm:$0xff] %v2233_v29  ;;  %3186 = vst [vmem:[#allocation35_spill] sm:$0xff] %v2238_v30  ;;  %v2250_v33 = vld [vmem:[#allocation4] sm:$0xff]  ;;  %v2252_v34 = vld [vmem:[#allocation4 + $0x8] sm:$0xff] }
  0x2d   :  { %3187 = vst [vmem:[#allocation36_spill] sm:$0xff] %v2243_v31  ;;  %3188 = vst [vmem:[#allocation37_spill] sm:$0xff] %v2250_v33  ;;  %v2254_v35 = vld [vmem:[#allocation4 + $0x10] sm:$0xff]  ;;  %v2256_v36 = vld [vmem:[#allocation4 + $0x18] sm:$0xff] }
  0x2e   :  { %3189 = vst [vmem:[#allocation38_spill] sm:$0xff] %v2252_v34  ;;  %3190 = vst [vmem:[#allocation39_spill] sm:$0xff] %v2254_v35  ;;  %v2258_v37 = vld [vmem:[#allocation4 + $0x20] sm:$0xff]  ;;  %v2260_v38 = vld [vmem:[#allocation4 + $0x28] sm:$0xff] }
  0x2f   :  { %3191 = vst [vmem:[#allocation40_spill] sm:$0xff] %v2256_v36  ;;  %3192 = vst [vmem:[#allocation41_spill] sm:$0xff] %v2258_v37  ;;  %v2262_v39 = vld [vmem:[#allocation4 + $0x30] sm:$0xff]  ;;  %v2264_v40 = vld [vmem:[#allocation4 + $0x38] sm:$0xff] }
  0x30   :  { %3193 = vst [vmem:[#allocation42_spill] sm:$0xff] %v2260_v38  ;;  %3194 = vst [vmem:[#allocation43_spill] sm:$0xff] %v2262_v39  ;;  %v2266_v41 = vld [vmem:[#allocation4 + $0x40] sm:$0xff]  ;;  %v2268_v42 = vld [vmem:[#allocation4 + $0x48] sm:$0xff] }
  0x31   :  { %3195 = vst [vmem:[#allocation44_spill] sm:$0xff] %v2264_v40  ;;  %3196 = vst [vmem:[#allocation45_spill] sm:$0xff] %v2266_v41  ;;  %v2270_v43 = vld [vmem:[#allocation4 + $0x50] sm:$0xff]  ;;  %v2272_v44 = vld [vmem:[#allocation4 + $0x58] sm:$0xff] }
  0x32   :  { %3197 = vst [vmem:[#allocation46_spill] sm:$0xff] %v2268_v42  ;;  %3198 = vst [vmem:[#allocation47_spill] sm:$0xff] %v2270_v43  ;;  %v2274_v45 = vld [vmem:[#allocation4 + $0x60] sm:$0xff]  ;;  %v2276_v46 = vld [vmem:[#allocation4 + $0x68] sm:$0xff] }
  0x33   :  { %3199 = vst [vmem:[#allocation48_spill] sm:$0xff] %v2272_v44  ;;  %3200 = vst [vmem:[#allocation49_spill] sm:$0xff] %v2276_v46  ;;  %v2278_v47 = vld [vmem:[#allocation4 + $0x70] sm:$0xff]  ;;  %v2280_v48 = vld [vmem:[#allocation4 + $0x78] sm:$0xff] }
  0x34   :  { %3201 = vst [vmem:[#allocation50_spill] sm:$0xff] %v2280_v48  ;;  %v2282_v49 = vld [vmem:[#allocation4 + $0x80] sm:$0xff]  ;;  %v2284_v50 = vld [vmem:[#allocation4 + $0x88] sm:$0xff]  ;;  %v2286_v51 = vld [vmem:[#allocation4 + $0x90] sm:$0xff] }
  0x35   :  { %v2288_v52 = vld [vmem:[#allocation4 + $0x98] sm:$0xff]  ;;  %v2290_v53 = vld [vmem:[#allocation4 + $0xa0] sm:$0xff]  ;;  %v2292_v54 = vld [vmem:[#allocation4 + $0xa8] sm:$0xff] }
  0x36   :  { %v2294_v55 = vld [vmem:[#allocation4 + $0xb0] sm:$0xff]  ;;  %v2296_v56 = vld [vmem:[#allocation4 + $0xb8] sm:$0xff]  ;;  %v2298_v57 = vld [vmem:[#allocation4 + $0xc0] sm:$0xff] }
  0x37   :  { %v2300_v58 = vld [vmem:[#allocation4 + $0xc8] sm:$0xff]  ;;  %v2302_v59 = vld [vmem:[#allocation4 + $0xd0] sm:$0xff]  ;;  %v2304_v60 = vld [vmem:[#allocation4 + $0xd8] sm:$0xff] }
  0x38   :  { %v2306_v61 = vld [vmem:[#allocation4 + $0xe0] sm:$0xff]  ;;  %v2308_v62 = vld [vmem:[#allocation4 + $0xe8] sm:$0xff]  ;;  %v2310_v63 = vld [vmem:[#allocation4 + $0xf0] sm:$0xff] }
  0x39   :  { %v2312_v0 = vld [vmem:[#allocation4 + $0xf8] sm:$0xff]  ;;  %v2314_v34 = vld [vmem:[#allocation4 + $0x100] sm:$0xff]  ;;  %v2316_v36 = vld [vmem:[#allocation4 + $0x108] sm:$0xff] }
  0x3a   :  { %3202 = vst [vmem:[#allocation51_spill] sm:$0xff] %v2312_v0  ;;  %3203 = vst [vmem:[#allocation52_spill] sm:$0xff] %v2314_v34  ;;  %v2318_v33 = vld [vmem:[#allocation4 + $0x110] sm:$0xff]  ;;  %v2320_v35 = vld [vmem:[#allocation4 + $0x118] sm:$0xff] }
  0x3b   :  { %3204 = vst [vmem:[#allocation53_spill] sm:$0xff] %v2316_v36  ;;  %3205 = vst [vmem:[#allocation54_spill] sm:$0xff] %v2318_v33  ;;  %v2322_v38 = vld [vmem:[#allocation4 + $0x120] sm:$0xff]  ;;  %v2324_v40 = vld [vmem:[#allocation4 + $0x128] sm:$0xff] }
  0x3c   :  { %3206 = vst [vmem:[#allocation55_spill] sm:$0xff] %v2320_v35  ;;  %3207 = vst [vmem:[#allocation56_spill] sm:$0xff] %v2322_v38  ;;  %v2326_v37 = vld [vmem:[#allocation4 + $0x130] sm:$0xff]  ;;  %v2328_v39 = vld [vmem:[#allocation4 + $0x138] sm:$0xff] }
  0x3d   :  { %3208 = vst [vmem:[#allocation57_spill] sm:$0xff] %v2324_v40  ;;  %3209 = vst [vmem:[#allocation58_spill] sm:$0xff] %v2326_v37  ;;  %v2330_v42 = vld [vmem:[#allocation4 + $0x140] sm:$0xff]  ;;  %v2332_v44 = vld [vmem:[#allocation4 + $0x148] sm:$0xff] }
  0x3e   :  { %3210 = vst [vmem:[#allocation59_spill] sm:$0xff] %v2328_v39  ;;  %3211 = vst [vmem:[#allocation60_spill] sm:$0xff] %v2330_v42  ;;  %v2334_v41 = vld [vmem:[#allocation4 + $0x150] sm:$0xff]  ;;  %v2336_v34 = vld [vmem:[#allocation4 + $0x158] sm:$0xff] }
  0x3f   :  { %3212 = vst [vmem:[#allocation61_spill] sm:$0xff] %v2332_v44  ;;  %3213 = vst [vmem:[#allocation62_spill] sm:$0xff] %v2334_v41  ;;  %v2338_v36 = vld [vmem:[#allocation4 + $0x160] sm:$0xff]  ;;  %v2340_v33 = vld [vmem:[#allocation4 + $0x168] sm:$0xff] }
  0x40   :  { %3214 = vst [vmem:[#allocation63_spill] sm:$0xff] %v2336_v34  ;;  %3215 = vst [vmem:[#allocation64_spill] sm:$0xff] %v2338_v36  ;;  %v2342_v35 = vld [vmem:[#allocation4 + $0x170] sm:$0xff]  ;;  %v2344_v38 = vld [vmem:[#allocation4 + $0x178] sm:$0xff] }
  0x41   :  { %3216 = vst [vmem:[#allocation65_spill] sm:$0xff] %v2340_v33  ;;  %3217 = vst [vmem:[#allocation66_spill] sm:$0xff] %v2342_v35  ;;  %v2346_v40 = vld [vmem:[#allocation4 + $0x180] sm:$0xff]  ;;  %v2348_v37 = vld [vmem:[#allocation4 + $0x188] sm:$0xff] }
  0x42   :  { %3218 = vst [vmem:[#allocation67_spill] sm:$0xff] %v2344_v38  ;;  %3219 = vst [vmem:[#allocation68_spill] sm:$0xff] %v2346_v40  ;;  %v2350_v39 = vld [vmem:[#allocation4 + $0x190] sm:$0xff]  ;;  %v2352_v42 = vld [vmem:[#allocation4 + $0x198] sm:$0xff] }
  0x43   :  { %3220 = vst [vmem:[#allocation69_spill] sm:$0xff] %v2348_v37  ;;  %3221 = vst [vmem:[#allocation70_spill] sm:$0xff] %v2350_v39  ;;  %v2354_v44 = vld [vmem:[#allocation4 + $0x1a0] sm:$0xff]  ;;  %v2356_v41 = vld [vmem:[#allocation4 + $0x1a8] sm:$0xff] }
  0x44   :  { %3222 = vst [vmem:[#allocation71_spill] sm:$0xff] %v2352_v42  ;;  %3223 = vst [vmem:[#allocation72_spill] sm:$0xff] %v2354_v44  ;;  %v2358_v34 = vld [vmem:[#allocation4 + $0x1b0] sm:$0xff]  ;;  %v2360_v36 = vld [vmem:[#allocation4 + $0x1b8] sm:$0xff] }
  0x45   :  { %3224 = vst [vmem:[#allocation73_spill] sm:$0xff] %v2356_v41  ;;  %3225 = vst [vmem:[#allocation74_spill] sm:$0xff] %v2358_v34  ;;  %v2362_v33 = vld [vmem:[#allocation4 + $0x1c0] sm:$0xff]  ;;  %v2364_v35 = vld [vmem:[#allocation4 + $0x1c8] sm:$0xff] }
  0x46   :  { %3226 = vst [vmem:[#allocation75_spill] sm:$0xff] %v2360_v36  ;;  %3227 = vst [vmem:[#allocation76_spill] sm:$0xff] %v2362_v33  ;;  %v2366_v38 = vld [vmem:[#allocation4 + $0x1d0] sm:$0xff]  ;;  %v2368_v40 = vld [vmem:[#allocation4 + $0x1d8] sm:$0xff] }
  0x47   :  { %3228 = vst [vmem:[#allocation77_spill] sm:$0xff] %v2364_v35  ;;  %3229 = vst [vmem:[#allocation78_spill] sm:$0xff] %v2366_v38  ;;  %v2370_v37 = vld [vmem:[#allocation4 + $0x1e0] sm:$0xff]  ;;  %v2372_v39 = vld [vmem:[#allocation4 + $0x1e8] sm:$0xff] }
  0x48   :  { %3230 = vst [vmem:[#allocation79_spill] sm:$0xff] %v2368_v40  ;;  %3231 = vst [vmem:[#allocation80_spill] sm:$0xff] %v2370_v37  ;;  %v2374_v42 = vld [vmem:[#allocation4 + $0x1f0] sm:$0xff]  ;;  %v2376_v44 = vld [vmem:[#allocation4 + $0x1f8] sm:$0xff] }
  0x49   :  { %3232 = vst [vmem:[#allocation81_spill] sm:$0xff] %v2372_v39  ;;  %3233 = vst [vmem:[#allocation82_spill] sm:$0xff] %v2374_v42  ;;  %v2378_v41 = vld [vmem:[#allocation4 + $0x200] sm:$0xff]  ;;  %v2380_v34 = vld [vmem:[#allocation4 + $0x208] sm:$0xff] }
  0x4a   :  { %3234 = vst [vmem:[#allocation83_spill] sm:$0xff] %v2376_v44  ;;  %3235 = vst [vmem:[#allocation84_spill] sm:$0xff] %v2378_v41  ;;  %v2382_v36 = vld [vmem:[#allocation4 + $0x210] sm:$0xff]  ;;  %v2384_v33 = vld [vmem:[#allocation4 + $0x218] sm:$0xff] }
  0x4b   :  { %3236 = vst [vmem:[#allocation85_spill] sm:$0xff] %v2380_v34  ;;  %3237 = vst [vmem:[#allocation86_spill] sm:$0xff] %v2382_v36  ;;  %v2386_v35 = vld [vmem:[#allocation4 + $0x220] sm:$0xff]  ;;  %v2388_v38 = vld [vmem:[#allocation4 + $0x228] sm:$0xff] }
  0x4c   :  { %3238 = vst [vmem:[#allocation87_spill] sm:$0xff] %v2384_v33  ;;  %3239 = vst [vmem:[#allocation88_spill] sm:$0xff] %v2386_v35  ;;  %v2390_v40 = vld [vmem:[#allocation4 + $0x230] sm:$0xff]  ;;  %v2392_v37 = vld [vmem:[#allocation4 + $0x238] sm:$0xff] }
  0x4d   :  { %3240 = vst [vmem:[#allocation89_spill] sm:$0xff] %v2388_v38  ;;  %3241 = vst [vmem:[#allocation90_spill] sm:$0xff] %v2390_v40  ;;  %v2394_v39 = vld [vmem:[#allocation4 + $0x240] sm:$0xff]  ;;  %v2396_v42 = vld [vmem:[#allocation4 + $0x248] sm:$0xff] }
  0x4e   :  { %3242 = vst [vmem:[#allocation91_spill] sm:$0xff] %v2392_v37  ;;  %3243 = vst [vmem:[#allocation92_spill] sm:$0xff] %v2394_v39  ;;  %v2398_v44 = vld [vmem:[#allocation4 + $0x250] sm:$0xff]  ;;  %v2400_v41 = vld [vmem:[#allocation4 + $0x258] sm:$0xff] }
  0x4f   :  { %3244 = vst [vmem:[#allocation93_spill] sm:$0xff] %v2396_v42  ;;  %3245 = vst [vmem:[#allocation94_spill] sm:$0xff] %v2398_v44  ;;  %v2402_v34 = vld [vmem:[#allocation4 + $0x260] sm:$0xff]  ;;  %v2404_v36 = vld [vmem:[#allocation4 + $0x268] sm:$0xff] }
  0x50   :  { %3246 = vst [vmem:[#allocation95_spill] sm:$0xff] %v2400_v41  ;;  %3247 = vst [vmem:[#allocation96_spill] sm:$0xff] %v2402_v34  ;;  %v2406_v33 = vld [vmem:[#allocation4 + $0x270] sm:$0xff]  ;;  %v2408_v35 = vld [vmem:[#allocation4 + $0x278] sm:$0xff] }
  0x51   :  { %3248 = vst [vmem:[#allocation97_spill] sm:$0xff] %v2404_v36  ;;  %3249 = vst [vmem:[#allocation98_spill] sm:$0xff] %v2406_v33  ;;  %v2410_v38 = vld [vmem:[#allocation4 + $0x280] sm:$0xff]  ;;  %v2412_v40 = vld [vmem:[#allocation4 + $0x288] sm:$0xff] }
  0x52   :  { %3250 = vst [vmem:[#allocation99_spill] sm:$0xff] %v2408_v35  ;;  %3251 = vst [vmem:[#allocation100_spill] sm:$0xff] %v2410_v38  ;;  %v2414_v37 = vld [vmem:[#allocation4 + $0x290] sm:$0xff]  ;;  %v2416_v39 = vld [vmem:[#allocation4 + $0x298] sm:$0xff] }
  0x53   :  { %3252 = vst [vmem:[#allocation101_spill] sm:$0xff] %v2412_v40  ;;  %3253 = vst [vmem:[#allocation102_spill] sm:$0xff] %v2414_v37  ;;  %v2418_v42 = vld [vmem:[#allocation4 + $0x2a0] sm:$0xff]  ;;  %v2420_v44 = vld [vmem:[#allocation4 + $0x2a8] sm:$0xff] }
  0x54   :  { %3254 = vst [vmem:[#allocation103_spill] sm:$0xff] %v2416_v39  ;;  %3255 = vst [vmem:[#allocation104_spill] sm:$0xff] %v2418_v42  ;;  %v2422_v41 = vld [vmem:[#allocation4 + $0x2b0] sm:$0xff]  ;;  %v2424_v34 = vld [vmem:[#allocation4 + $0x2b8] sm:$0xff]  ;;  %v221_v39 = vlaneseq }
  0x55   :  { %3256 = vst [vmem:[#allocation105_spill] sm:$0xff] %v2420_v44  ;;  %3257 = vst [vmem:[#allocation106_spill] sm:$0xff] %v2422_v41  ;;  %v2426_v36 = vld [vmem:[#allocation4 + $0x2c0] sm:$0xff]  ;;  %v2428_v33 = vld [vmem:[#allocation4 + $0x2c8] sm:$0xff] }
  0x56   :  { %3258 = vst [vmem:[#allocation107_spill] sm:$0xff] %v2424_v34  ;;  %3259 = vst [vmem:[#allocation108_spill] sm:$0xff] %v2426_v36  ;;  %v2430_v35 = vld [vmem:[#allocation4 + $0x2d0] sm:$0xff]  ;;  %v2432_v38 = vld [vmem:[#allocation4 + $0x2d8] sm:$0xff] }
  0x57   :  { %3260 = vst [vmem:[#allocation109_spill] sm:$0xff] %v2428_v33  ;;  %3261 = vst [vmem:[#allocation110_spill] sm:$0xff] %v2430_v35  ;;  %v2434_v40 = vld [vmem:[#allocation4 + $0x2e0] sm:$0xff]  ;;  %v2436_v37 = vld [vmem:[#allocation4 + $0x2e8] sm:$0xff] }
  0x58   :  { %3262 = vst [vmem:[#allocation111_spill] sm:$0xff] %v2432_v38  ;;  %3263 = vst [vmem:[#allocation112_spill] sm:$0xff] %v2434_v40  ;;  %v2438_v42 = vld [vmem:[#allocation4 + $0x2f0] sm:$0xff]  ;;  %v2440_v44 = vld [vmem:[#allocation4 + $0x2f8] sm:$0xff] }
  0x59   :  { %3264 = vst [vmem:[#allocation113_spill] sm:$0xff] %v2436_v37  ;;  %3265 = vst [vmem:[#allocation114_spill] sm:$0xff] %v2438_v42  ;;  %v2442_v41 = vld [vmem:[#allocation4 + $0x300] sm:$0xff]  ;;  %v2444_v34 = vld [vmem:[#allocation4 + $0x308] sm:$0xff] }
  0x5a   :  { %3266 = vst [vmem:[#allocation115_spill] sm:$0xff] %v2440_v44  ;;  %3267 = vst [vmem:[#allocation116_spill] sm:$0xff] %v2442_v41  ;;  %v2446_v36 = vld [vmem:[#allocation4 + $0x310] sm:$0xff]  ;;  %v2448_v33 = vld [vmem:[#allocation4 + $0x318] sm:$0xff]  ;;  %v222_v44 = vshrl.u32 %v221_v39, 7 }
  0x5b   :  { %3268 = vst [vmem:[#allocation117_spill] sm:$0xff] %v2444_v34  ;;  %3269 = vst [vmem:[#allocation118_spill] sm:$0xff] %v2446_v36  ;;  %v2450_v35 = vld [vmem:[#allocation4 + $0x320] sm:$0xff]  ;;  %v2452_v38 = vld [vmem:[#allocation4 + $0x328] sm:$0xff] }
  0x5c   :  { %3270 = vst [vmem:[#allocation119_spill] sm:$0xff] %v2448_v33  ;;  %3271 = vst [vmem:[#allocation120_spill] sm:$0xff] %v2450_v35  ;;  %v2454_v40 = vld [vmem:[#allocation4 + $0x330] sm:$0xff]  ;;  %v2456_v37 = vld [vmem:[#allocation4 + $0x338] sm:$0xff]  ;;  %v231_v46 = vsub.s32 2, %v222_v44 }
  0x5d   :  { %3272 = vst [vmem:[#allocation121_spill] sm:$0xff] %v2452_v38  ;;  %3273 = vst [vmem:[#allocation122_spill] sm:$0xff] %v2454_v40  ;;  %v2458_v43 = vld [vmem:[#allocation4 + $0x340] sm:$0xff]  ;;  %v2460_v42 = vld [vmem:[#allocation4 + $0x348] sm:$0xff] }
  0x5e   :  { %3274 = vst [vmem:[#allocation123_spill] sm:$0xff] %v2456_v37  ;;  %3275 = vst [vmem:[#allocation124_spill] sm:$0xff] %v2458_v43  ;;  %v2462_v41 = vld [vmem:[#allocation4 + $0x350] sm:$0xff]  ;;  %v2464_v34 = vld [vmem:[#allocation4 + $0x358] sm:$0xff] }
  0x5f   :  { %3276 = vst [vmem:[#allocation125_spill] sm:$0xff] %v2460_v42  ;;  %3277 = vst [vmem:[#allocation126_spill] sm:$0xff] %v2462_v41  ;;  %v2466_v36 = vld [vmem:[#allocation4 + $0x360] sm:$0xff]  ;;  %v2468_v33 = vld [vmem:[#allocation4 + $0x368] sm:$0xff] }
  0x60   :  { %3278 = vst [vmem:[#allocation127_spill] sm:$0xff] %v2464_v34  ;;  %3279 = vst [vmem:[#allocation128_spill] sm:$0xff] %v2466_v36  ;;  %v2470_v35 = vld [vmem:[#allocation4 + $0x370] sm:$0xff]  ;;  %v2472_v38 = vld [vmem:[#allocation4 + $0x378] sm:$0xff]  ;;  %v223_v34 = vsub.s32 0, %v222_v44 }
  0x61   :  { %3280 = vst [vmem:[#allocation129_spill] sm:$0xff] %v2468_v33  ;;  %3281 = vst [vmem:[#allocation130_spill] sm:$0xff] %v2470_v35  ;;  %v2474_v40 = vld [vmem:[#allocation4 + $0x380] sm:$0xff]  ;;  %v2476_v37 = vld [vmem:[#allocation4 + $0x388] sm:$0xff] }
  0x62   :  { %3282 = vst [vmem:[#allocation131_spill] sm:$0xff] %v2472_v38  ;;  %3283 = vst [vmem:[#allocation132_spill] sm:$0xff] %v2474_v40  ;;  %v2478_v43 = vld [vmem:[#allocation4 + $0x390] sm:$0xff]  ;;  %v2480_v42 = vld [vmem:[#allocation4 + $0x398] sm:$0xff]  ;;  %v227_v38 = vsub.s32 1, %v222_v44  ;;  %v235_v40 = vsub.s32 3, %v222_v44 }
  0x63   :  { %3284 = vst [vmem:[#allocation133_spill] sm:$0xff] %v2476_v37  ;;  %3285 = vst [vmem:[#allocation134_spill] sm:$0xff] %v2478_v43  ;;  %v2482_v39 = vld [vmem:[#allocation4 + $0x3a0] sm:$0xff]  ;;  %v2484_v41 = vld [vmem:[#allocation4 + $0x3a8] sm:$0xff] }
  0x64   :  { %3286 = vst [vmem:[#allocation135_spill] sm:$0xff] %v2480_v42  ;;  %3287 = vst [vmem:[#allocation136_spill] sm:$0xff] %v2482_v39  ;;  %v2486_v36 = vld [vmem:[#allocation4 + $0x3b0] sm:$0xff]  ;;  %v2488_v33 = vld [vmem:[#allocation4 + $0x3b8] sm:$0xff] }
  0x65   :  { %3288 = vst [vmem:[#allocation137_spill] sm:$0xff] %v2484_v41  ;;  %3289 = vst [vmem:[#allocation138_spill] sm:$0xff] %v2486_v36  ;;  %v2490_v35 = vld [vmem:[#allocation4 + $0x3c0] sm:$0xff]  ;;  %v2492_v48 = vld [vmem:[#allocation4 + $0x3c8] sm:$0xff] }
  0x66   :  { %3290 = vst [vmem:[#allocation139_spill] sm:$0xff] %v2488_v33  ;;  %3291 = vst [vmem:[#allocation140_spill] sm:$0xff] %v2490_v35  ;;  %v2494_v37 = vld [vmem:[#allocation4 + $0x3d0] sm:$0xff]  ;;  %v2496_v43 = vld [vmem:[#allocation4 + $0x3d8] sm:$0xff] }
  0x67   :  { %3292 = vst [vmem:[#allocation141_spill] sm:$0xff] %v2492_v48  ;;  %3293 = vst [vmem:[#allocation142_spill] sm:$0xff] %v2494_v37  ;;  %v2498_v42 = vld [vmem:[#allocation4 + $0x3e0] sm:$0xff]  ;;  %v2500_v39 = vld [vmem:[#allocation4 + $0x3e8] sm:$0xff] }
  0x68   :  { %3294 = vst [vmem:[#allocation143_spill] sm:$0xff] %v2496_v43  ;;  %3295 = vst [vmem:[#allocation144_spill] sm:$0xff] %v2498_v42  ;;  %v2502_v41 = vld [vmem:[#allocation4 + $0x3f0] sm:$0xff]  ;;  %v2504_v36 = vld [vmem:[#allocation4 + $0x3f8] sm:$0xff] }
  0x69   :  { %3296 = vst [vmem:[#allocation145_spill] sm:$0xff] %v2500_v39  ;;  %3297 = vst [vmem:[#allocation146_spill] sm:$0xff] %v2502_v41  ;;  %v219_v33 = vld [vmem:[%s2926_s3] sm:$0xf]  ;;  %v1642_v44 = vld [vmem:[%s2926_s3 + $0x4] sm:$0xf] }
  0x6a   :  { %3298 = vst [vmem:[#allocation147_spill] sm:$0xff] %v2504_v36  ;;  %v2512_v48 = vrot.slane %v219_v33, %v223_v34  ;;  %v2514_v35 = vrot.slane %v219_v33, %v227_v38  ;;  %v2516_v43 = vrot.slane %v219_v33, %v231_v46  ;;  %v2518_v37 = vrot.slane %v219_v33, %v235_v40 }
  0x6b   :  { %v2520_v39 = vrot.slane %v1642_v44, %v223_v34  ;;  %v2522_v42 = vrot.slane %v1642_v44, %v227_v38  ;;  %v2524_v36 = vrot.slane %v1642_v44, %v231_v46  ;;  %v2526_v41 = vrot.slane %v1642_v44, %v235_v40 }
  0x6c   :  { %3299 = vst [vmem:[#allocation148_spill] sm:$0xff] %v2516_v43 }
  0x6d LB: > { %v3300_v24 = vld [vmem:[#allocation33_spill] sm:$0xff]  ;;  %v3301_v23 = vld [vmem:[#allocation32_spill] sm:$0xff]  ;;  %v3302_v22 = vld [vmem:[#allocation31_spill] sm:$0xff]  ;;  %v1670_v34 = vcombine.high %v2213_v25, %v2223_v27  ;;  %v1672_v46 = vcombine.high %v2218_v26, %v2228_v28  ;;  %v1669_v44 = vcombine.low %v2213_v25, %v2223_v27  ;;  %s1832_s3 = sshll.u32 %s2039_s24, 5  ;;  %s1814_s28 = sshll.u32 %s2039_s24, 3  ;;  %s2039_s24 = sphi %s2528_s24, %s269_s24  }
  0x6e   : > { %v3303_v21 = vld [vmem:[#allocation30_spill] sm:$0xff]  ;;  %v3304_v20 = vld [vmem:[#allocation29_spill] sm:$0xff]  ;;  %v3305_v19 = vld [vmem:[#allocation28_spill] sm:$0xff]  ;;  %s272_s27 = scalar_lea.vmem %s2923_s0, %s1832_s3  ;;  %s1421_s7 = scalar_lea.vmem %s2929_s6, %s1814_s28 }
  0x6f   : > { %v3306_v18 = vld [vmem:[#allocation27_spill] sm:$0xff]  ;;  %v3307_v17 = vld [vmem:[#allocation26_spill] sm:$0xff]  ;;  %v3308_v16 = vld [vmem:[#allocation25_spill] sm:$0xff]  ;;  %s269_s24 = sadd.s32 1, %s2039_s24  }
  0x70   : > { %v3309_v15 = vld [vmem:[#allocation24_spill] sm:$0xff]  ;;  %v3310_v14 = vld [vmem:[#allocation23_spill] sm:$0xff]  ;;  %v3311_v13 = vld [vmem:[#allocation22_spill] sm:$0xff]  ;;  %p266_p10 = scmp.ge.s32.totalorder %s269_s24, 8  }
  0x71   : > { %v3312_v12 = vld [vmem:[#allocation21_spill] sm:$0xff]  ;;  %v3313_v11 = vld [vmem:[#allocation20_spill] sm:$0xff]  ;;  %v3314_v10 = vld [vmem:[#allocation19_spill] sm:$0xff] }
  0x72   : > { %v3315_v9 = vld [vmem:[#allocation18_spill] sm:$0xff]  ;;  %v3316_v8 = vld [vmem:[#allocation17_spill] sm:$0xff]  ;;  %v3317_v7 = vld [vmem:[#allocation16_spill] sm:$0xff] }
  0x73   : > { %v3318_v6 = vld [vmem:[#allocation15_spill] sm:$0xff]  ;;  %v3319_v5 = vld [vmem:[#allocation14_spill] sm:$0xff]  ;;  %v3320_v4 = vld [vmem:[#allocation13_spill] sm:$0xff] }
  0x74   : > { %v3321_v3 = vld [vmem:[#allocation12_spill] sm:$0xff]  ;;  %v3322_v2 = vld [vmem:[#allocation11_spill] sm:$0xff]  ;;  %v3323_v1 = vld [vmem:[#allocation10_spill] sm:$0xff] }
  0x75   : > { %v3324_v0 = vld [vmem:[#allocation51_spill] sm:$0xff]  ;;  %v3326_v31 = vld [vmem:[#allocation36_spill] sm:$0xff]  ;;  %v3327_v29 = vld [vmem:[#allocation34_spill] sm:$0xff] }
  0x76   : > { %v3325_v30 = vld [vmem:[#allocation35_spill] sm:$0xff]  ;;  %v1674_v43 = vcombine.high %v3327_v29, %v3326_v31  ;;  %v1673_v33 = vcombine.low %v3327_v29, %v3326_v31  ;;  %v1666_v29 = vcombine.high %v3303_v21, %v3301_v23  ;;  %v1671_v31 = vcombine.low %v2218_v26, %v2228_v28 }
  0x77   : > { %v1676_v38 = vcombine.high %v3325_v30, %v2248_v32  ;;  %v1675_v40 = vcombine.low %v3325_v30, %v2248_v32  ;;  %v2048_v30 = vmov 0  }
  0x78   : > { %439 = vmatprep.subr.bf16.mxu0 %v1674_v43  ;;  %v1668_v43 = vcombine.high %v3302_v22, %v3300_v24  ;;  %471 = vmatprep.mubr.bf16.mxu0 %v2048_v30 }
  0x79   : > { %440 = vmatpush1.bf16.msra.mxu0 %v1673_v33  ;;  %480 = vmatprep.subr.bf16.mxu1 %v1676_v38  ;;  %v1665_v33 = vcombine.low %v3303_v21, %v3301_v23  ;;  %v1667_v38 = vcombine.low %v3302_v22, %v3300_v24 }
  0x7a   : > { %441 = vmatprep.subr.bf16.mxu0 %v1670_v34  ;;  %481 = vmatpush1.bf16.msra.mxu1 %v1675_v40  ;;  %v1662_v34 = vcombine.high %v3307_v17, %v3305_v19  ;;  %v1664_v40 = vcombine.high %v3306_v18, %v3304_v20 }
  0x7b   : > { %482 = vmatprep.subr.bf16.mxu1 %v1672_v46  ;;  %512 = vmatprep.mubr.bf16.mxu1 %v2048_v30  ;;  %v1661_v46 = vcombine.low %v3307_v17, %v3305_v19  ;;  %v1657_v30 = vcombine.low %v3311_v13, %v3309_v15  ;;  %v3369_v17 = vld [vmem:[#allocation57_spill] sm:$0xff] }
  0x7d   : > { %442 = vmatpush1.bf16.msra.mxu0 %v1669_v44  ;;  %v1660_v44 = vcombine.high %v3310_v14, %v3308_v16 }
  0x7e   : > { %443 = vmatprep.subr.bf16.mxu0 %v1666_v29  ;;  %483 = vmatpush1.bf16.msra.mxu1 %v1671_v31  ;;  %v1658_v29 = vcombine.high %v3311_v13, %v3309_v15  ;;  %v1663_v31 = vcombine.low %v3306_v18, %v3304_v20 }
  0x7f   : > { %484 = vmatprep.subr.bf16.mxu1 %v1668_v43  ;;  %v1654_v43 = vcombine.high %v3315_v9, %v3313_v11 }
  0x81   : > { %444 = vmatpush1.bf16.msra.mxu0 %v1665_v33  ;;  %v1659_v33 = vcombine.low %v3310_v14, %v3308_v16 }
  0x82   : > { %445 = vmatprep.subr.bf16.mxu0 %v1662_v34  ;;  %485 = vmatpush1.bf16.msra.mxu1 %v1667_v38  ;;  %v1656_v34 = vcombine.high %v3314_v10, %v3312_v12  ;;  %v1653_v38 = vcombine.low %v3315_v9, %v3313_v11 }
  0x83   : > { %486 = vmatprep.subr.bf16.mxu1 %v1664_v40  ;;  %v1650_v40 = vcombine.high %v3319_v5, %v3317_v7 }
  0x85   : > { %446 = vmatpush1.bf16.msra.mxu0 %v1661_v46  ;;  %v1655_v46 = vcombine.low %v3314_v10, %v3312_v12 }
  0x86   : > { %447 = vmatprep.subr.bf16.mxu0 %v1658_v29  ;;  %487 = vmatpush1.bf16.msra.mxu1 %v1663_v31  ;;  %v1652_v29 = vcombine.high %v3318_v6, %v3316_v8  ;;  %v1649_v31 = vcombine.low %v3319_v5, %v3317_v7 }
  0x87   : > { %488 = vmatprep.subr.bf16.mxu1 %v1660_v44  ;;  %v1646_v44 = vcombine.high %v3323_v1, %v3321_v3 }
  0x89   : > { %448 = vmatpush1.bf16.msra.mxu0 %v1657_v30  ;;  %v1651_v30 = vcombine.low %v3318_v6, %v3316_v8 }
  0x8a   : > { %449 = vmatprep.subr.bf16.mxu0 %v1654_v43  ;;  %489 = vmatpush1.bf16.msra.mxu1 %v1659_v33  ;;  %v1648_v43 = vcombine.high %v3322_v2, %v3320_v4  ;;  %v1645_v33 = vcombine.low %v3323_v1, %v3321_v3 }
  0x8b   : > { %490 = vmatprep.subr.bf16.mxu1 %v1656_v34  ;;  %v277_v34 = vld [vmem:[#allocation2 + $0x10] sm:$0xff] }
  0x8d   : > { %450 = vmatpush1.bf16.msra.mxu0 %v1653_v38  ;;  %v1647_v38 = vcombine.low %v3322_v2, %v3320_v4  ;;  %v3337_v4 = vld [vmem:[#allocation42_spill] sm:$0xff] }
  0x8e   : > { %451 = vmatprep.subr.bf16.mxu0 %v1650_v40  ;;  %491 = vmatpush1.bf16.msra.mxu1 %v1655_v46  ;;  %v1709_v40 = vcombine.high %v2306_v61, %v2310_v63  ;;  %v1711_v46 = vcombine.high %v2308_v62, %v3324_v0 }
  0x8f   : > { %492 = vmatprep.subr.bf16.mxu1 %v1652_v29  ;;  %v278_v29 = vpack.c.bf16 %v277_v34, %v277_v34  ;;  %v1706_v34 = vcombine.low %v2300_v58, %v2304_v60 }
  0x91   : > { %452 = vmatpush1.bf16.msra.mxu0 %v1649_v31  ;;  %v1708_v31 = vcombine.low %v2306_v61, %v2310_v63 }
  0x92   : > { %453 = vmatprep.subr.bf16.mxu0 %v1646_v44  ;;  %493 = vmatpush1.bf16.msra.mxu1 %v1651_v30  ;;  %v1710_v44 = vcombine.low %v2308_v62, %v3324_v0  ;;  %v1705_v30 = vcombine.high %v2298_v57, %v2302_v59  ;;  %v3333_v0 = vld [vmem:[#allocation46_spill] sm:$0xff] }
  0x93   : > { %494 = vmatprep.subr.bf16.mxu1 %v1648_v43  ;;  %v1707_v43 = vcombine.high %v2300_v58, %v2304_v60 }
  0x95   : > { %454 = vmatpush1.bf16.msra.mxu0 %v1645_v33  ;;  %v1704_v33 = vcombine.low %v2298_v57, %v2302_v59 }
  0x96   : > { %495 = vmatpush1.bf16.msra.mxu1 %v1647_v38  ;;  %876 = vmatprep.subr.bf16.mxu0 %v1709_v40  ;;  %v1701_v38 = vcombine.high %v2290_v53, %v2294_v55  ;;  %v1703_v40 = vcombine.high %v2292_v54, %v2296_v56 }
  0x97   : > { %917 = vmatprep.subr.bf16.mxu1 %v1711_v46  ;;  %v1700_v46 = vcombine.low %v2290_v53, %v2294_v55 }
  0x98   : > { %472 = vmatmul.mubr.bf16.vlgmr.msra.gmra.mxu0 %v278_v29 }
  0x99   : > { %513 = vmatmul.mubr.bf16.vlgmr.msra.gmra.mxu1 %v278_v29  ;;  %877 = vmatpush1.bf16.msra.mxu0 %v1708_v31  ;;  %v1702_v29 = vcombine.low %v2292_v54, %v2296_v56  ;;  %v1697_v31 = vcombine.high %v2282_v49, %v2286_v51 }
  0x9a   : > { %918 = vmatpush1.bf16.msra.mxu1 %v1710_v44  ;;  %878 = vmatprep.subr.bf16.mxu0 %v1705_v30  ;;  %v1699_v44 = vcombine.high %v2284_v50, %v2288_v52  ;;  %v1696_v30 = vcombine.low %v2282_v49, %v2286_v51  ;;  %v1815_v51 = vld [vmem:[%s2928_s5] ss:$0 sm:$0xff] (%p266_p10) }
  0x9b   : > { %919 = vmatprep.subr.bf16.mxu1 %v1707_v43  ;;  %v1698_v43 = vcombine.low %v2284_v50, %v2288_v52 }
  0x9d   : > { %879 = vmatpush1.bf16.msra.mxu0 %v1704_v33  ;;  %v1693_v33 = vcombine.high %v2274_v45, %v2278_v47 }
  0x9e   : > { %920 = vmatpush1.bf16.msra.mxu1 %v1706_v34  ;;  %880 = vmatprep.subr.bf16.mxu0 %v1701_v38  ;;  %v3328_v34 = vld [vmem:[#allocation50_spill] sm:$0xff]  ;;  %v3329_v38 = vld [vmem:[#allocation49_spill] sm:$0xff] }
  0x9f   : > { %921 = vmatprep.subr.bf16.mxu1 %v1703_v40  ;;  %v1695_v40 = vcombine.high %v3329_v38, %v3328_v34 }
  0xa1   : > { %881 = vmatpush1.bf16.msra.mxu0 %v1700_v46  ;;  %v1692_v46 = vcombine.low %v2274_v45, %v2278_v47 }
  0xa2   : > { %922 = vmatpush1.bf16.msra.mxu1 %v1702_v29  ;;  %882 = vmatprep.subr.bf16.mxu0 %v1697_v31  ;;  %v1694_v29 = vcombine.low %v3329_v38, %v3328_v34  ;;  %v3330_v31 = vld [vmem:[#allocation47_spill] sm:$0xff] }
  0xa3   : > { %923 = vmatprep.subr.bf16.mxu1 %v1699_v44  ;;  %v3331_v44 = vld [vmem:[#allocation45_spill] sm:$0xff] }
  0xa4   : > { %v1688_v2 = vcombine.low %v3331_v44, %v3330_v31 }
  0xa5   : > { %883 = vmatpush1.bf16.msra.mxu0 %v1696_v30  ;;  %v1689_v30 = vcombine.high %v3331_v44, %v3330_v31 }
  0xa6   : > { %924 = vmatpush1.bf16.msra.mxu1 %v1698_v43  ;;  %884 = vmatprep.subr.bf16.mxu0 %v1693_v33  ;;  %v3332_v43 = vld [vmem:[#allocation48_spill] sm:$0xff]  ;;  %v3334_v33 = vld [vmem:[#allocation43_spill] sm:$0xff] }
  0xa7   : > { %925 = vmatprep.subr.bf16.mxu1 %v1695_v40  ;;  %v1691_v1 = vcombine.high %v3333_v0, %v3332_v43  ;;  %v1690_v3 = vcombine.low %v3333_v0, %v3332_v43  ;;  %v3335_v40 = vld [vmem:[#allocation41_spill] sm:$0xff]  ;;  %v3341_v0 = vld [vmem:[#allocation38_spill] sm:$0xff] }
  0xa8   : > { %v1684_v6 = vcombine.low %v3335_v40, %v3334_v33 }
  0xa9   : > { %885 = vmatpush1.bf16.msra.mxu0 %v1692_v46  ;;  %v1685_v46 = vcombine.high %v3335_v40, %v3334_v33 }
  0xaa   : > { %926 = vmatpush1.bf16.msra.mxu1 %v1694_v29  ;;  %886 = vmatprep.subr.bf16.mxu0 %v1689_v30  ;;  %v3336_v29 = vld [vmem:[#allocation44_spill] sm:$0xff]  ;;  %v3338_v30 = vld [vmem:[#allocation39_spill] sm:$0xff] }
  0xab   : > { %927 = vmatprep.subr.bf16.mxu1 %v1691_v1  ;;  %v1687_v5 = vcombine.high %v3337_v4, %v3336_v29  ;;  %v1686_v7 = vcombine.low %v3337_v4, %v3336_v29  ;;  %v3339_v1 = vld [vmem:[#allocation37_spill] sm:$0xff] }
  0xac   : > { %v1680_v9 = vcombine.low %v3339_v1, %v3338_v30  ;;  %v3345_v4 = vld [vmem:[#allocation81_spill] sm:$0xff] }
  0xad   : > { %887 = vmatpush1.bf16.msra.mxu0 %v1688_v2  ;;  %v1681_v2 = vcombine.high %v3339_v1, %v3338_v30 }
  0xae   : > { %928 = vmatpush1.bf16.msra.mxu1 %v1690_v3  ;;  %888 = vmatprep.subr.bf16.mxu0 %v1685_v46  ;;  %v3340_v3 = vld [vmem:[#allocation40_spill] sm:$0xff]  ;;  %v3342_v46 = vld [vmem:[#allocation82_spill] sm:$0xff] }
  0xaf   : > { %929 = vmatprep.subr.bf16.mxu1 %v1687_v5  ;;  %v1683_v8 = vcombine.high %v3341_v0, %v3340_v3  ;;  %v1682_v10 = vcombine.low %v3341_v0, %v3340_v3  ;;  %v3343_v5 = vld [vmem:[#allocation80_spill] sm:$0xff]  ;;  %v3349_v0 = vld [vmem:[#allocation77_spill] sm:$0xff] }
  0xb0   : > { %v1740_v12 = vcombine.low %v3343_v5, %v3342_v46 }
  0xb1   : > { %889 = vmatpush1.bf16.msra.mxu0 %v1684_v6  ;;  %v1741_v6 = vcombine.high %v3343_v5, %v3342_v46 }
  0xb2   : > { %930 = vmatpush1.bf16.msra.mxu1 %v1686_v7  ;;  %890 = vmatprep.subr.bf16.mxu0 %v1681_v2  ;;  %v3344_v7 = vld [vmem:[#allocation83_spill] sm:$0xff]  ;;  %v3346_v2 = vld [vmem:[#allocation78_spill] sm:$0xff] }
  0xb3   : > { %931 = vmatprep.subr.bf16.mxu1 %v1683_v8  ;;  %v1743_v11 = vcombine.high %v3345_v4, %v3344_v7  ;;  %v1742_v13 = vcombine.low %v3345_v4, %v3344_v7  ;;  %v3347_v8 = vld [vmem:[#allocation76_spill] sm:$0xff]  ;;  %v3353_v4 = vld [vmem:[#allocation73_spill] sm:$0xff] }
  0xb4   : > { %v1736_v3 = vcombine.low %v3347_v8, %v3346_v2 }
  0xb5   : > { %891 = vmatpush1.bf16.msra.mxu0 %v1680_v9  ;;  %v1737_v9 = vcombine.high %v3347_v8, %v3346_v2 }
  0xb6   : > { %932 = vmatpush1.bf16.msra.mxu1 %v1682_v10  ;;  %892 = vmatprep.subr.bf16.mxu0 %v1741_v6  ;;  %v3348_v10 = vld [vmem:[#allocation79_spill] sm:$0xff]  ;;  %v3350_v6 = vld [vmem:[#allocation74_spill] sm:$0xff] }
  0xb7   : > { %933 = vmatprep.subr.bf16.mxu1 %v1743_v11  ;;  %v1739_v1 = vcombine.high %v3349_v0, %v3348_v10  ;;  %v1738_v14 = vcombine.low %v3349_v0, %v3348_v10  ;;  %v3351_v11 = vld [vmem:[#allocation72_spill] sm:$0xff]  ;;  %v3357_v0 = vld [vmem:[#allocation69_spill] sm:$0xff] }
  0xb8   : > { %v1732_v7 = vcombine.low %v3351_v11, %v3350_v6 }
  0xb9   : > { %893 = vmatpush2.bf16.msra.mxu0 %v1740_v12  ;;  %v1733_v12 = vcombine.high %v3351_v11, %v3350_v6 }
  0xba   : > { %934 = vmatpush2.bf16.msra.mxu1 %v1742_v13  ;;  %894 = vmatprep.subr.bf16.mxu0 %v1737_v9  ;;  %v3352_v13 = vld [vmem:[#allocation75_spill] sm:$0xff]  ;;  %v3354_v9 = vld [vmem:[#allocation70_spill] sm:$0xff] }
  0xbb   : > { %935 = vmatprep.subr.bf16.mxu1 %v1739_v1  ;;  %v1735_v5 = vcombine.high %v3353_v4, %v3352_v13  ;;  %v1734_v15 = vcombine.low %v3353_v4, %v3352_v13  ;;  %v3355_v1 = vld [vmem:[#allocation68_spill] sm:$0xff]  ;;  %v3361_v4 = vld [vmem:[#allocation65_spill] sm:$0xff] }
  0xbc   : > { %v1728_v8 = vcombine.low %v3355_v1, %v3354_v9 }
  0xbd   : > { %895 = vmatpush2.bf16.msra.mxu0 %v1736_v3  ;;  %v1729_v3 = vcombine.high %v3355_v1, %v3354_v9  ;;  %v3362_v1 = vld [vmem:[#allocation62_spill] sm:$0xff]  ;;  %v3363_v9 = vld [vmem:[#allocation60_spill] sm:$0xff] }
  0xbe   : > { %936 = vmatpush2.bf16.msra.mxu1 %v1738_v14  ;;  %896 = vmatprep.subr.bf16.mxu0 %v1733_v12  ;;  %v3356_v14 = vld [vmem:[#allocation71_spill] sm:$0xff]  ;;  %v3358_v12 = vld [vmem:[#allocation66_spill] sm:$0xff]  ;;  %v1721_v16 = vcombine.high %v3363_v9, %v3362_v1 }
  0xbf   : > { %937 = vmatprep.subr.bf16.mxu1 %v1735_v5  ;;  %v1731_v2 = vcombine.high %v3357_v0, %v3356_v14  ;;  %v1730_v10 = vcombine.low %v3357_v0, %v3356_v14  ;;  %v3359_v5 = vld [vmem:[#allocation64_spill] sm:$0xff]  ;;  %v3364_v0 = vld [vmem:[#allocation63_spill] sm:$0xff] }
  0xc0   : > { %v1724_v11 = vcombine.low %v3359_v5, %v3358_v12 }
  0xc1   : > { %897 = vmatpush2.bf16.msra.mxu0 %v1732_v7  ;;  %v1725_v7 = vcombine.high %v3359_v5, %v3358_v12  ;;  %v3367_v12 = vld [vmem:[#allocation56_spill] sm:$0xff] }
  0xc2   : > { %938 = vmatpush2.bf16.msra.mxu1 %v1734_v15  ;;  %898 = vmatprep.subr.bf16.mxu0 %v1729_v3  ;;  %v3360_v15 = vld [vmem:[#allocation67_spill] sm:$0xff]  ;;  %v3365_v3 = vld [vmem:[#allocation61_spill] sm:$0xff] }
  0xc3   : > { %939 = vmatprep.subr.bf16.mxu1 %v1731_v2  ;;  %v1727_v6 = vcombine.high %v3361_v4, %v3360_v15  ;;  %v1726_v13 = vcombine.low %v3361_v4, %v3360_v15  ;;  %v1723_v2 = vcombine.high %v3365_v3, %v3364_v0  ;;  %v1722_v5 = vcombine.low %v3365_v3, %v3364_v0  ;;  %v3366_v4 = vld [vmem:[#allocation58_spill] sm:$0xff]  ;;  %v3368_v15 = vld [vmem:[#allocation59_spill] sm:$0xff]  ;;  %v3373_v0 = vld [vmem:[#allocation53_spill] sm:$0xff] }
  0xc4   : > { %v1717_v14 = vcombine.high %v3367_v12, %v3366_v4  ;;  %v1719_v18 = vcombine.high %v3369_v17, %v3368_v15  ;;  %v3377_v3 = vld [vmem:[#allocation113_spill] sm:$0xff] }
  0xc5   : > { %899 = vmatpush2.bf16.msra.mxu0 %v1728_v8  ;;  %v553_v8 = vld [vmem:[#allocation2] sm:$0xff] }
  0xc6   : > { %940 = vmatpush2.bf16.msra.mxu1 %v1730_v10  ;;  %900 = vmatprep.subr.bf16.mxu0 %v1725_v7  ;;  %v1720_v10 = vcombine.low %v3363_v9, %v3362_v1  ;;  %v555_v19 = vpack.c.bf16 %v553_v8, %v553_v8 }
  0xc7   : > { %941 = vmatprep.subr.bf16.mxu1 %v1727_v6  ;;  %v1716_v6 = vcombine.low %v3367_v12, %v3366_v4 }
  0xc8   : > { %908 = vmatprep.mubr.bf16.mxu0 %v555_v19  ;;  %949 = vmatprep.mubr.bf16.mxu1 %v555_v19 }
  0xc9   : > { %901 = vmatpush2.bf16.msra.mxu0 %v1724_v11  ;;  %v1718_v11 = vcombine.low %v3369_v17, %v3368_v15  ;;  %v275_v17 = vld [vmem:[%s272_s27 + $0x10] sm:$0xff] }
  0xca   : > { %942 = vmatpush2.bf16.msra.mxu1 %v1726_v13  ;;  %902 = vmatprep.subr.bf16.mxu0 %v1721_v16  ;;  %v3370_v16 = vld [vmem:[#allocation54_spill] sm:$0xff]  ;;  %v3371_v13 = vld [vmem:[#allocation52_spill] sm:$0xff] }
  0xcb   : > { %943 = vmatprep.subr.bf16.mxu1 %v1723_v2  ;;  %v1713_v7 = vcombine.high %v3371_v13, %v3370_v16  ;;  %v3372_v2 = vld [vmem:[#allocation55_spill] sm:$0xff]  ;;  %v1712_v19 = vcombine.low %v3371_v13, %v3370_v16 }
  0xcc   : > { %v1715_v1 = vcombine.high %v3373_v0, %v3372_v2  ;;  %v276_v16 = vld [vmem:[%s272_s27 + $0x18] sm:$0xff] }
  0xcd   : > { %903 = vmatpush2.bf16.msra.mxu0 %v1720_v10  ;;  %v3376_v10 = vld [vmem:[#allocation115_spill] sm:$0xff] }
  0xce   : > { %944 = vmatpush2.bf16.msra.mxu1 %v1722_v5  ;;  %904 = vmatprep.subr.bf16.mxu0 %v1717_v14  ;;  %v1714_v5 = vcombine.low %v3373_v0, %v3372_v2  ;;  %v3374_v14 = vld [vmem:[#allocation114_spill] sm:$0xff]  ;;  %v1778_v4 = vcombine.high %v3377_v3, %v3376_v10  ;;  %v274_v0 = vld [vmem:[%s272_s27 + $0x8] sm:$0xff] }
  0xcf   : > { %945 = vmatprep.subr.bf16.mxu1 %v1719_v18  ;;  %v3375_v18 = vld [vmem:[#allocation112_spill] sm:$0xff] }
  0xd0   : > { %v1776_v8 = vcombine.high %v3375_v18, %v3374_v14 }
  0xd1   : > { %905 = vmatpush2.bf16.msra.mxu0 %v1716_v6  ;;  %v273_v6 = vld [vmem:[%s272_s27] sm:$0xff] }
  0xd2   : > { %946 = vmatpush2.bf16.msra.mxu1 %v1718_v11  ;;  %906 = vmatprep.subr.bf16.mxu0 %v1713_v7 }
  0xd3   : > { %947 = vmatprep.subr.bf16.mxu1 %v1715_v1 }
  0xd5   : > { %907 = vmatpush2.bf16.msra.mxu0 %v1712_v19 }
  0xd6   : > { %948 = vmatpush2.bf16.msra.mxu1 %v1714_v5  ;;  %1310 = vmatprep.subr.bf16.mxu0 %v1776_v8 }
  0xd7   : > { %1351 = vmatprep.subr.bf16.mxu1 %v1778_v4 }
 0x158   : > { %v473_v11 = vpop.f32.mrf.mxu0 }
 0x159   : > { %v521_v7 = vadd.f32 %v473_v11, %v273_v6  ;;  %v514_v1 = vpop.f32.mrf.mxu1 }
 0x15a   : > { %v475_v19 = vpop.f32.mrf.mxu0  ;;  %v523_v21 = vadd.f32 %v514_v1, %v275_v17 }
 0x15b   : > { %v1677_v5 = vmul.f32 -1.442695, %v521_v7  ;;  %v522_v2 = vadd.f32 %v475_v19, %v274_v0  ;;  %v516_v9 = vpop.f32.mrf.mxu1 }
 0x15c   : > { %v477_v12 = vpop.f32.mrf.mxu0  ;;  %v524_v20 = vadd.f32 %v516_v9, %v276_v16  ;;  %v3378_v9 = vld [vmem:[#allocation110_spill] sm:$0xff]  ;;  %v3379_v16 = vld [vmem:[#allocation108_spill] sm:$0xff] }
 0x15d   : > { %1901 = vpow2.f32 %v1677_v5  ;;  %v1678_v13 = vmul.f32 -1.442695, %v522_v2  ;;  %v518_v15 = vpop.f32.mrf.mxu1  ;;  %v1772_v1 = vcombine.high %v3379_v16, %v3378_v9 }
 0x15e   : > { %v478_v8 = vpop.f32.mrf.mxu0  ;;  %v1679_v22 = vmul.f32 -1.442695, %v524_v20  ;;  %v544_v15 = vld [vmem:[#allocation3 + $0x8] sm:$0xff] }
 0x15f   : > { %1903 = vpow2.f32 %v1678_v13  ;;  %v519_v4 = vpop.f32.mrf.mxu1 }
 0x160   : > { %1905 = vtanh.f32 %v523_v21  ;;  %v3380_v4 = vld [vmem:[#allocation111_spill] sm:$0xff] }
 0x161   : > { %1907 = vpow2.f32 %v1679_v22  ;;  %v1775_v22 = vcombine.low %v3375_v18, %v3374_v14  ;;  %v3433_v18 = vld [vmem:[#allocation121_spill] sm:$0xff] }
 0x16a   : > { %v1902_v23 = vpop.eup %1901 }
 0x16b   : > { %v528_v24 = vadd.f32 1.0, %v1902_v23  ;;  %v1777_v23 = vcombine.low %v3377_v3, %v3376_v10 }
 0x16c   : > { %v1904_v6 = vpop.eup %1903 }
 0x16d   : > { %1909 = vrcp.f32 %v528_v24  ;;  %v534_v0 = vadd.f32 1.0, %v1904_v6  ;;  %v1906_v12 = vpop.eup %1905  ;;  %v3381_v6 = vld [vmem:[#allocation109_spill] sm:$0xff] }
 0x16e   : > { %v1908_v11 = vpop.eup %1907 }
 0x16f   : > { %1911 = vrcp.f32 %v534_v0  ;;  %v541_v13 = vadd.f32 1.0, %v1908_v11  ;;  %v1774_v0 = vcombine.high %v3381_v6, %v3380_v4  ;;  %v1773_v11 = vcombine.low %v3381_v6, %v3380_v4  ;;  %v3397_v6 = vld [vmem:[#allocation93_spill] sm:$0xff] }
 0x171   : > { %1913 = vrcp.f32 %v541_v13  ;;  %v3384_v13 = vld [vmem:[#allocation107_spill] sm:$0xff] }
 0x17a   : > { %v1910_v2 = vpop.eup %1909 }
 0x17b   : > { %v546_v5 = vmul.f32 %v1910_v2, %v1906_v12  ;;  %v1771_v12 = vcombine.low %v3379_v16, %v3378_v9  ;;  %v3382_v2 = vld [vmem:[#allocation106_spill] sm:$0xff] }
 0x17c   : > { %v1912_v7 = vpop.eup %1911 }
 0x17d   : > { %v545_v19 = vmul.f32 %v1912_v7, %v544_v15  ;;  %v3383_v15 = vld [vmem:[#allocation104_spill] sm:$0xff] }
 0x17e   : > { %v1914_v17 = vpop.eup %1913  ;;  %v1768_v7 = vcombine.high %v3383_v15, %v3382_v2 }
 0x17f   : > { %v547_v8 = vadd.f32 %v546_v5, %v545_v19  ;;  %v3385_v19 = vld [vmem:[#allocation105_spill] sm:$0xff] }
 0x180   : > { %v1770_v5 = vcombine.high %v3385_v19, %v3384_v13 }
 0x181   : > { %1915 = vtanh.f32 %v547_v8  ;;  %550 = vst [vmem:[#allocation3 + $0x8] sm:$0xff] %v547_v8  ;;  %v1767_v8 = vcombine.low %v3383_v15, %v3382_v2 }
 0x18e   : > { %v1916_v20 = vpop.eup %1915 }
 0x18f   : > { %v549_v21 = vmul.f32 %v1916_v20, %v1914_v17  ;;  %v1769_v17 = vcombine.low %v3385_v19, %v3384_v13  ;;  %v3386_v20 = vld [vmem:[#allocation102_spill] sm:$0xff] }
 0x191   : > { %551 = vst [vmem:[#allocation2 + $0x10] sm:$0xff] %v549_v21  ;;  %v554_v24 = vpack.c.bf16 %v549_v21, %v549_v21  ;;  %v3387_v21 = vld [vmem:[#allocation100_spill] sm:$0xff] }
 0x193   : > { %909 = vmatmul.mubr.bf16.vlgmr.msra.gmra.mxu0 %v554_v24  ;;  %950 = vmatmul.mubr.bf16.vlgmr.msra.gmra.mxu1 %v554_v24  ;;  %v3389_v24 = vld [vmem:[#allocation101_spill] sm:$0xff] }
 0x194   : > { %1311 = vmatpush1.bf16.msra.mxu0 %v1775_v22  ;;  %1352 = vmatpush1.bf16.msra.mxu1 %v1777_v23  ;;  %v1764_v22 = vcombine.high %v3387_v21, %v3386_v20  ;;  %v3388_v23 = vld [vmem:[#allocation103_spill] sm:$0xff] }
 0x195   : > { %1312 = vmatprep.subr.bf16.mxu0 %v1772_v1  ;;  %1353 = vmatprep.subr.bf16.mxu1 %v1774_v0  ;;  %v1766_v1 = vcombine.high %v3389_v24, %v3388_v23  ;;  %v1763_v0 = vcombine.low %v3387_v21, %v3386_v20 }
 0x198   : > { %1313 = vmatpush1.bf16.msra.mxu0 %v1771_v12  ;;  %1354 = vmatpush1.bf16.msra.mxu1 %v1773_v11  ;;  %v1765_v12 = vcombine.low %v3389_v24, %v3388_v23  ;;  %v3390_v11 = vld [vmem:[#allocation98_spill] sm:$0xff] }
 0x199   : > { %1314 = vmatprep.subr.bf16.mxu0 %v1768_v7  ;;  %1355 = vmatprep.subr.bf16.mxu1 %v1770_v5  ;;  %v3391_v7 = vld [vmem:[#allocation96_spill] sm:$0xff] }
 0x19a   : > { %v1760_v5 = vcombine.high %v3391_v7, %v3390_v11  ;;  %v1759_v3 = vcombine.low %v3391_v7, %v3390_v11  ;;  %v3401_v7 = vld [vmem:[#allocation89_spill] sm:$0xff] }
 0x19c   : > { %1315 = vmatpush1.bf16.msra.mxu0 %v1767_v8  ;;  %1356 = vmatpush1.bf16.msra.mxu1 %v1769_v17  ;;  %v3392_v8 = vld [vmem:[#allocation99_spill] sm:$0xff]  ;;  %v3393_v17 = vld [vmem:[#allocation97_spill] sm:$0xff] }
 0x19d   : > { %1316 = vmatprep.subr.bf16.mxu0 %v1764_v22  ;;  %1357 = vmatprep.subr.bf16.mxu1 %v1766_v1  ;;  %v1762_v2 = vcombine.high %v3393_v17, %v3392_v8  ;;  %v1761_v4 = vcombine.low %v3393_v17, %v3392_v8  ;;  %v3394_v22 = vld [vmem:[#allocation94_spill] sm:$0xff]  ;;  %v3395_v1 = vld [vmem:[#allocation92_spill] sm:$0xff]  ;;  %v3432_v17 = vld [vmem:[#allocation123_spill] sm:$0xff] }
 0x19e   : > { %v1755_v10 = vcombine.low %v3395_v1, %v3394_v22  ;;  %v1786_v19 = vcombine.high %v3433_v18, %v3432_v17 }
 0x1a0   : > { %1317 = vmatpush1.bf16.msra.mxu0 %v1763_v0  ;;  %1358 = vmatpush1.bf16.msra.mxu1 %v1765_v12  ;;  %v1756_v0 = vcombine.high %v3395_v1, %v3394_v22  ;;  %v3396_v12 = vld [vmem:[#allocation95_spill] sm:$0xff]  ;;  %v3405_v1 = vld [vmem:[#allocation85_spill] sm:$0xff] }
 0x1a1   : > { %1318 = vmatprep.subr.bf16.mxu0 %v1760_v5  ;;  %1359 = vmatprep.subr.bf16.mxu1 %v1762_v2  ;;  %v1758_v9 = vcombine.high %v3397_v6, %v3396_v12  ;;  %v1757_v13 = vcombine.low %v3397_v6, %v3396_v12  ;;  %v3398_v5 = vld [vmem:[#allocation90_spill] sm:$0xff]  ;;  %v3399_v2 = vld [vmem:[#allocation88_spill] sm:$0xff] }
 0x1a2   : > { %v1751_v11 = vcombine.low %v3399_v2, %v3398_v5 }
 0x1a4   : > { %1319 = vmatpush1.bf16.msra.mxu0 %v1759_v3  ;;  %1360 = vmatpush1.bf16.msra.mxu1 %v1761_v4  ;;  %v1752_v3 = vcombine.high %v3399_v2, %v3398_v5  ;;  %v3400_v4 = vld [vmem:[#allocation91_spill] sm:$0xff]  ;;  %v3409_v2 = vld [vmem:[#allocation145_spill] sm:$0xff] }
 0x1a5   : > { %1320 = vmatprep.subr.bf16.mxu0 %v1756_v0  ;;  %1361 = vmatprep.subr.bf16.mxu1 %v1758_v9  ;;  %v1754_v8 = vcombine.high %v3401_v7, %v3400_v4  ;;  %v1753_v14 = vcombine.low %v3401_v7, %v3400_v4  ;;  %v3402_v0 = vld [vmem:[#allocation86_spill] sm:$0xff]  ;;  %v3403_v9 = vld [vmem:[#allocation84_spill] sm:$0xff] }
 0x1a6   : > { %v1747_v12 = vcombine.low %v3403_v9, %v3402_v0 }
 0x1a8   : > { %1321 = vmatpush1.bf16.msra.mxu0 %v1755_v10  ;;  %1362 = vmatpush1.bf16.msra.mxu1 %v1757_v13  ;;  %v1748_v10 = vcombine.high %v3403_v9, %v3402_v0  ;;  %v3404_v13 = vld [vmem:[#allocation87_spill] sm:$0xff]  ;;  %v3413_v0 = vld [vmem:[#allocation141_spill] sm:$0xff] }
 0x1a9   : > { %1322 = vmatprep.subr.bf16.mxu0 %v1752_v3  ;;  %1363 = vmatprep.subr.bf16.mxu1 %v1754_v8  ;;  %v1750_v6 = vcombine.high %v3405_v1, %v3404_v13  ;;  %v1749_v15 = vcombine.low %v3405_v1, %v3404_v13  ;;  %v3406_v3 = vld [vmem:[#allocation146_spill] sm:$0xff]  ;;  %v3407_v8 = vld [vmem:[#allocation144_spill] sm:$0xff] }
 0x1aa   : > { %v1807_v5 = vcombine.low %v3407_v8, %v3406_v3 }
 0x1ac   : > { %1323 = vmatpush1.bf16.msra.mxu0 %v1751_v11  ;;  %1364 = vmatpush1.bf16.msra.mxu1 %v1753_v14  ;;  %v1808_v11 = vcombine.high %v3407_v8, %v3406_v3  ;;  %v3408_v14 = vld [vmem:[#allocation147_spill] sm:$0xff] }
 0x1ad   : > { %1324 = vmatprep.subr.bf16.mxu0 %v1748_v10  ;;  %1365 = vmatprep.subr.bf16.mxu1 %v1750_v6  ;;  %v1810_v4 = vcombine.high %v3409_v2, %v3408_v14  ;;  %v1809_v7 = vcombine.low %v3409_v2, %v3408_v14  ;;  %v3410_v10 = vld [vmem:[#allocation142_spill] sm:$0xff]  ;;  %v3411_v6 = vld [vmem:[#allocation140_spill] sm:$0xff]  ;;  %v3417_v2 = vld [vmem:[#allocation137_spill] sm:$0xff] }
 0x1ae   : > { %v1803_v9 = vcombine.low %v3411_v6, %v3410_v10 }
 0x1b0   : > { %1325 = vmatpush1.bf16.msra.mxu0 %v1747_v12  ;;  %1366 = vmatpush1.bf16.msra.mxu1 %v1749_v15  ;;  %v1804_v12 = vcombine.high %v3411_v6, %v3410_v10  ;;  %v3412_v15 = vld [vmem:[#allocation143_spill] sm:$0xff] }
 0x1b1   : > { %1326 = vmatprep.subr.bf16.mxu0 %v1808_v11  ;;  %1367 = vmatprep.subr.bf16.mxu1 %v1810_v4  ;;  %v1806_v1 = vcombine.high %v3413_v0, %v3412_v15  ;;  %v1805_v13 = vcombine.low %v3413_v0, %v3412_v15  ;;  %v3414_v11 = vld [vmem:[#allocation138_spill] sm:$0xff]  ;;  %v3415_v4 = vld [vmem:[#allocation136_spill] sm:$0xff]  ;;  %v3421_v0 = vld [vmem:[#allocation133_spill] sm:$0xff] }
 0x1b2   : > { %v1799_v8 = vcombine.low %v3415_v4, %v3414_v11 }
 0x1b4   : > { %1327 = vmatpush2.bf16.msra.mxu0 %v1807_v5  ;;  %1368 = vmatpush2.bf16.msra.mxu1 %v1809_v7  ;;  %v1800_v5 = vcombine.high %v3415_v4, %v3414_v11  ;;  %v3416_v7 = vld [vmem:[#allocation139_spill] sm:$0xff] }
 0x1b5   : > { %1328 = vmatprep.subr.bf16.mxu0 %v1804_v12  ;;  %1369 = vmatprep.subr.bf16.mxu1 %v1806_v1  ;;  %v1802_v3 = vcombine.high %v3417_v2, %v3416_v7  ;;  %v1801_v14 = vcombine.low %v3417_v2, %v3416_v7  ;;  %v3418_v12 = vld [vmem:[#allocation134_spill] sm:$0xff]  ;;  %v3419_v1 = vld [vmem:[#allocation132_spill] sm:$0xff]  ;;  %v3425_v2 = vld [vmem:[#allocation129_spill] sm:$0xff] }
 0x1b6   : > { %v1795_v10 = vcombine.low %v3419_v1, %v3418_v12 }
 0x1b8   : > { %1329 = vmatpush2.bf16.msra.mxu0 %v1803_v9  ;;  %1370 = vmatpush2.bf16.msra.mxu1 %v1805_v13  ;;  %v1796_v9 = vcombine.high %v3419_v1, %v3418_v12  ;;  %v3420_v13 = vld [vmem:[#allocation135_spill] sm:$0xff]  ;;  %v3426_v1 = vld [vmem:[#allocation126_spill] sm:$0xff]  ;;  %v3427_v12 = vld [vmem:[#allocation124_spill] sm:$0xff] }
 0x1b9   : > { %1330 = vmatprep.subr.bf16.mxu0 %v1800_v5  ;;  %1371 = vmatprep.subr.bf16.mxu1 %v1802_v3  ;;  %v1798_v6 = vcombine.high %v3421_v0, %v3420_v13  ;;  %v1797_v15 = vcombine.low %v3421_v0, %v3420_v13  ;;  %v3422_v5 = vld [vmem:[#allocation130_spill] sm:$0xff]  ;;  %v3423_v3 = vld [vmem:[#allocation128_spill] sm:$0xff]  ;;  %v1788_v16 = vcombine.high %v3427_v12, %v3426_v1  ;;  %v3428_v0 = vld [vmem:[#allocation127_spill] sm:$0xff] }
 0x1ba   : > { %v1791_v7 = vcombine.low %v3423_v3, %v3422_v5  ;;  %v3431_v13 = vld [vmem:[#allocation120_spill] sm:$0xff] }
 0x1bc   : > { %1331 = vmatpush2.bf16.msra.mxu0 %v1799_v8  ;;  %1372 = vmatpush2.bf16.msra.mxu1 %v1801_v14  ;;  %v1792_v8 = vcombine.high %v3423_v3, %v3422_v5  ;;  %v3424_v14 = vld [vmem:[#allocation131_spill] sm:$0xff] }
 0x1bd   : > { %1332 = vmatprep.subr.bf16.mxu0 %v1796_v9  ;;  %1373 = vmatprep.subr.bf16.mxu1 %v1798_v6  ;;  %v1794_v4 = vcombine.high %v3425_v2, %v3424_v14  ;;  %v1793_v11 = vcombine.low %v3425_v2, %v3424_v14  ;;  %v3429_v9 = vld [vmem:[#allocation125_spill] sm:$0xff]  ;;  %v3430_v2 = vld [vmem:[#allocation122_spill] sm:$0xff] }
 0x1be   : > { %v1790_v6 = vcombine.high %v3429_v9, %v3428_v0  ;;  %v1789_v3 = vcombine.low %v3429_v9, %v3428_v0  ;;  %v1784_v14 = vcombine.high %v3431_v13, %v3430_v2 }
 0x1c0   : > { %1333 = vmatpush2.bf16.msra.mxu0 %v1795_v10  ;;  %1374 = vmatpush2.bf16.msra.mxu1 %v1797_v15  ;;  %v987_v10 = vld [vmem:[#allocation2 + $0x8] sm:$0xff]  ;;  %v1787_v15 = vcombine.low %v3427_v12, %v3426_v1 }
 0x1c1   : > { %1334 = vmatprep.subr.bf16.mxu0 %v1792_v8  ;;  %1375 = vmatprep.subr.bf16.mxu1 %v1794_v4  ;;  %v989_v5 = vpack.c.bf16 %v987_v10, %v987_v10  ;;  %v1785_v4 = vcombine.low %v3433_v18, %v3432_v17  ;;  %v3437_v10 = vld [vmem:[#allocation117_spill] sm:$0xff] }
 0x1c3   : > { %1342 = vmatprep.mubr.bf16.mxu0 %v989_v5  ;;  %1383 = vmatprep.mubr.bf16.mxu1 %v989_v5 }
 0x1c4   : > { %1335 = vmatpush2.bf16.msra.mxu0 %v1791_v7  ;;  %1376 = vmatpush2.bf16.msra.mxu1 %v1793_v11  ;;  %v1783_v11 = vcombine.low %v3431_v13, %v3430_v2  ;;  %v3435_v7 = vld [vmem:[#allocation116_spill] sm:$0xff] }
 0x1c5   : > { %1336 = vmatprep.subr.bf16.mxu0 %v1788_v16  ;;  %1377 = vmatprep.subr.bf16.mxu1 %v1790_v6  ;;  %v3434_v16 = vld [vmem:[#allocation118_spill] sm:$0xff]  ;;  %v3436_v6 = vld [vmem:[#allocation119_spill] sm:$0xff] }
 0x1c6   : > { %v1780_v8 = vcombine.high %v3435_v7, %v3434_v16  ;;  %v1782_v0 = vcombine.high %v3437_v10, %v3436_v6  ;;  %v1779_v5 = vcombine.low %v3435_v7, %v3434_v16 }
 0x1c8   : > { %1337 = vmatpush2.bf16.msra.mxu0 %v1787_v15  ;;  %1378 = vmatpush2.bf16.msra.mxu1 %v1789_v3  ;;  %v1781_v3 = vcombine.low %v3437_v10, %v3436_v6 }
 0x1c9   : > { %1338 = vmatprep.subr.bf16.mxu0 %v1784_v14  ;;  %1379 = vmatprep.subr.bf16.mxu1 %v1786_v19 }
 0x1cc   : > { %1339 = vmatpush2.bf16.msra.mxu0 %v1783_v11  ;;  %1380 = vmatpush2.bf16.msra.mxu1 %v1785_v4 }
 0x1cd   : > { %1340 = vmatprep.subr.bf16.mxu0 %v1780_v8  ;;  %1381 = vmatprep.subr.bf16.mxu1 %v1782_v0 }
 0x1d0   : > { %1341 = vmatpush2.bf16.msra.mxu0 %v1779_v5  ;;  %1382 = vmatpush2.bf16.msra.mxu1 %v1781_v3  ;;  %v3438_v3 = vld [vmem:[#allocation148_spill] sm:$0xff] }
 0x253   : > { %v910_v14 = vpop.f32.mrf.mxu0  ;;  %v951_v19 = vpop.f32.mrf.mxu1 }
 0x254   : > { %v911_v15 = vadd.f32 %v910_v14, %v2512_v48  ;;  %v952_v6 = vadd.f32 %v951_v19, %v3438_v3 }
 0x255   : > { %v912_v1 = vpop.f32.mrf.mxu0  ;;  %v953_v2 = vpop.f32.mrf.mxu1 }
 0x256   : > { %v1744_v9 = vmul.f32 -1.442695, %v911_v15  ;;  %v913_v11 = vadd.f32 %v912_v1, %v2514_v35  ;;  %v954_v0 = vadd.f32 %v953_v2, %v2518_v37  ;;  %v1953_v35 = vld [vmem:[#allocation6 + $0x18] sm:$0xff] (%p266_p10)   ;;  %v1955_v37 = vld [vmem:[#allocation6 + $0x8] sm:$0xff] (%p266_p10)  }
 0x257   : > { %v914_v4 = vpop.f32.mrf.mxu0  ;;  %v955_v12 = vpop.f32.mrf.mxu1 }
 0x258   : > { %1917 = vpow2.f32 %v1744_v9  ;;  %v1745_v7 = vmul.f32 -1.442695, %v913_v11  ;;  %v1746_v8 = vmul.f32 -1.442695, %v954_v0  ;;  %v978_v9 = vld [vmem:[#allocation3] sm:$0xff] }
 0x259   : > { %v915_v13 = vpop.f32.mrf.mxu0  ;;  %v956_v16 = vpop.f32.mrf.mxu1 }
 0x25a   : > { %1919 = vpow2.f32 %v1745_v7 }
 0x25b   : > { %1921 = vpow2.f32 %v1746_v8 }
 0x265   : > { %v1918_v5 = vpop.eup %1917 }
 0x266   : > { %v961_v10 = vadd.f32 1.0, %v1918_v5 }
 0x267   : > { %v1920_v14 = vpop.eup %1919 }
 0x268   : > { %1923 = vrcp.f32 %v961_v10  ;;  %v967_v15 = vadd.f32 1.0, %v1920_v14  ;;  %v1922_v1 = vpop.eup %1921 }
 0x269   : > { %1925 = vtanh.f32 %v952_v6  ;;  %v974_v16 = vadd.f32 1.0, %v1922_v1 }
 0x26a   : > { %1927 = vrcp.f32 %v967_v15 }
 0x26b   : > { %1929 = vrcp.f32 %v974_v16 }
 0x275   : > { %v1924_v12 = vpop.eup %1923 }
 0x276   : > { %v1926_v11 = vpop.eup %1925 }
 0x277   : > { %v1928_v13 = vpop.eup %1927  ;;  %v980_v7 = vmul.f32 %v1926_v11, %v1924_v12 }
 0x278   : > { %v979_v4 = vmul.f32 %v1928_v13, %v978_v9  ;;  %v1930_v19 = vpop.eup %1929 }
 0x27a   : > { %v981_v2 = vadd.f32 %v980_v7, %v979_v4 }
 0x27c   : > { %984 = vst [vmem:[#allocation3] sm:$0xff] %v981_v2  ;;  %1931 = vtanh.f32 %v981_v2 }
 0x289   : > { %v1932_v0 = vpop.eup %1931 }
 0x28a   : > { %v983_v5 = vmul.f32 %v1932_v0, %v1930_v19 }
 0x28c   : > { %985 = vst [vmem:[#allocation2] sm:$0xff] %v983_v5  ;;  %v988_v10 = vpack.c.bf16 %v983_v5, %v983_v5 }
 0x28e   : > { %1343 = vmatmul.mubr.bf16.vlgmr.msra.gmra.mxu0 %v988_v10  ;;  %1384 = vmatmul.mubr.bf16.vlgmr.msra.gmra.mxu1 %v988_v10 }
 0x34e   : > { %v1344_v6 = vpop.f32.mrf.mxu0  ;;  %v1385_v8 = vpop.f32.mrf.mxu1 }
 0x34f   : > { %v1345_v3 = vadd.f32 %v1344_v6, %v2520_v39  ;;  %v1386_v0 = vadd.f32 %v1385_v8, %v2524_v36  ;;  %v1954_v36 = vld [vmem:[#allocation6 + $0x10] sm:$0xff] (%p266_p10)  }
 0x350   : > { %v1346_v14 = vpop.f32.mrf.mxu0  ;;  %v1387_v15 = vpop.f32.mrf.mxu1 }
 0x351   : > { %v1811_v1 = vmul.f32 -1.442695, %v1345_v3  ;;  %v1347_v12 = vadd.f32 %v1346_v14, %v2522_v42  ;;  %v1388_v4 = vadd.f32 %v1387_v15, %v2526_v41  ;;  %v1956_v41 = vld [vmem:[#allocation6] sm:$0xff] (%p266_p10)  }
 0x352   : > { %v1348_v9 = vpop.f32.mrf.mxu0  ;;  %v1389_v11 = vpop.f32.mrf.mxu1 }
 0x353   : > { %1933 = vpow2.f32 %v1811_v1  ;;  %v1812_v13 = vmul.f32 -1.442695, %v1347_v12  ;;  %v1813_v2 = vmul.f32 -1.442695, %v1388_v4  ;;  %v1412_v1 = vld [vmem:[#allocation3 + $0x10] sm:$0xff] }
 0x354   : > { %v1349_v16 = vpop.f32.mrf.mxu0  ;;  %v1390_v7 = vpop.f32.mrf.mxu1 }
 0x355   : > { %1935 = vpow2.f32 %v1812_v13 }
 0x356   : > { %1937 = vpow2.f32 %v1813_v2  ;;  %v1949_v2 = vld [vmem:[#allocation6 + $0x38] sm:$0xff] (%p266_p10)  }
 0x357   :  { %1845 = vmatprep.subr.bf16.mxu0 (%p266_p10), %v1949_v2  ;;  %1869 = vmatprep.subr.bf16.mxu1 (%p266_p10), %v1949_v2 }
 0x358   :  { %1846 = vmatpush3.bf16.msra.mxu0 (%p266_p10), %v1949_v2  ;;  %1877 = vmatpush3.bf16.msra.mxu1 (%p266_p10), %v1949_v2 }
 0x360   : > { %v1934_v19 = vpop.eup %1933 }
 0x361   : > { %v1395_v5 = vadd.f32 1.0, %v1934_v19  ;;  %v1950_v19 = vld [vmem:[#allocation6 + $0x30] sm:$0xff] (%p266_p10)  }
 0x362   : > { %v1936_v10 = vpop.eup %1935  ;;  %1847 = vmatprep.subr.bf16.mxu0 (%p266_p10), %v1950_v19  ;;  %1870 = vmatprep.subr.bf16.mxu1 (%p266_p10), %v1950_v19 }
 0x363   : > { %1939 = vrcp.f32 %v1395_v5  ;;  %v1401_v6 = vadd.f32 1.0, %v1936_v10  ;;  %v1938_v3 = vpop.eup %1937  ;;  %1848 = vmatpush3.bf16.msra.mxu0 (%p266_p10), %v1950_v19  ;;  %1878 = vmatpush3.bf16.msra.mxu1 (%p266_p10), %v1950_v19  ;;  %v1952_v5 = vld [vmem:[#allocation6 + $0x20] sm:$0xff] (%p266_p10)  }
 0x364   : > { %1941 = vtanh.f32 %v1386_v0  ;;  %v1408_v11 = vadd.f32 1.0, %v1938_v3  ;;  %v1951_v0 = vld [vmem:[#allocation6 + $0x28] sm:$0xff] (%p266_p10)  }
 0x365   : > { %1943 = vrcp.f32 %v1401_v6  ;;  %1849 = vmatprep.subr.bf16.mxu0 (%p266_p10), %v1951_v0  ;;  %1871 = vmatprep.subr.bf16.mxu1 (%p266_p10), %v1951_v0 }
 0x366   : > { %1945 = vrcp.f32 %v1408_v11 }
 0x367   :  { %1850 = vmatpush3.bf16.msra.mxu0 (%p266_p10), %v1951_v0  ;;  %1879 = vmatpush3.bf16.msra.mxu1 (%p266_p10), %v1951_v0 }
 0x368   :  { %1851 = vmatprep.subr.bf16.mxu0 (%p266_p10), %v1952_v5  ;;  %1872 = vmatprep.subr.bf16.mxu1 (%p266_p10), %v1952_v5 }
 0x36b   :  { %1852 = vmatpush3.bf16.msra.mxu0 (%p266_p10), %v1952_v5  ;;  %1880 = vmatpush3.bf16.msra.mxu1 (%p266_p10), %v1952_v5 }
 0x36c   :  { %1853 = vmatprep.subr.bf16.mxu0 (%p266_p10), %v1953_v35  ;;  %1873 = vmatprep.subr.bf16.mxu1 (%p266_p10), %v1953_v35 }
 0x36f   :  { %1854 = vmatpush3.bf16.msra.mxu0 (%p266_p10), %v1953_v35  ;;  %1881 = vmatpush3.bf16.msra.mxu1 (%p266_p10), %v1953_v35 }
 0x370   : > { %v1940_v14 = vpop.eup %1939  ;;  %1855 = vmatprep.subr.bf16.mxu0 (%p266_p10), %v1954_v36  ;;  %1874 = vmatprep.subr.bf16.mxu1 (%p266_p10), %v1954_v36 }
 0x371   : > { %v1942_v12 = vpop.eup %1941 }
 0x372   : > { %v1944_v9 = vpop.eup %1943  ;;  %v1414_v13 = vmul.f32 %v1942_v12, %v1940_v14 }
 0x373   : > { %v1413_v15 = vmul.f32 %v1944_v9, %v1412_v1  ;;  %v1946_v8 = vpop.eup %1945  ;;  %1856 = vmatpush3.bf16.msra.mxu0 (%p266_p10), %v1954_v36  ;;  %1882 = vmatpush3.bf16.msra.mxu1 (%p266_p10), %v1954_v36 }
 0x374   :  { %1857 = vmatprep.subr.bf16.mxu0 (%p266_p10), %v1955_v37  ;;  %1875 = vmatprep.subr.bf16.mxu1 (%p266_p10), %v1955_v37 }
 0x375   : > { %v1415_v16 = vadd.f32 %v1414_v13, %v1413_v15 }
 0x377   : > { %1947 = vtanh.f32 %v1415_v16  ;;  %1418 = vst [vmem:[#allocation3 + $0x10] sm:$0xff] %v1415_v16  ;;  %1858 = vmatpush3.bf16.msra.mxu0 (%p266_p10), %v1955_v37  ;;  %1883 = vmatpush3.bf16.msra.mxu1 (%p266_p10), %v1955_v37 }
 0x378   :  { %1859 = vmatprep.subr.bf16.mxu0 (%p266_p10), %v1956_v41  ;;  %1876 = vmatprep.subr.bf16.mxu1 (%p266_p10), %v1956_v41 }
 0x37b   :  { %1860 = vmatpush3.bf16.msra.mxu0 (%p266_p10), %v1956_v41  ;;  %1884 = vmatpush3.bf16.msra.mxu1 (%p266_p10), %v1956_v41 }
 0x383   :  { %268 = sbr.rel (!%p266_p10) target bundleno = 109 (0x6d), region = 67 }
 0x384   : > { %v1948_v7 = vpop.eup %1947 }
 0x385   : > { %v1417_v4 = vmul.f32 %v1948_v7, %v1946_v8 }
 0x387   : > { %1419 = vst [vmem:[#allocation2 + $0x8] sm:$0xff] %v1417_v4  ;;  %1422 = vst [vmem:[%s1421_s7] sm:$0xff] %v1417_v4 }
 0x38e   :  { %v1423_v10 = vld [vmem:[%s2929_s6] sm:$0xff]  ;;  %v1424_v25 = vld [vmem:[%s2929_s6 + $0x8] sm:$0xff]  ;;  %v1425_v42 = vld [vmem:[%s2929_s6 + $0x10] sm:$0xff] }
 0x38f   :  { %v1427_v26 = vld [vmem:[%s2929_s6 + $0x20] sm:$0xff]  ;;  %v1431_v27 = vpack.c.bf16 %v1424_v25, %v1423_v10  ;;  %v1428_v28 = vld [vmem:[%s2929_s6 + $0x28] sm:$0xff]  ;;  %v1426_v45 = vld [vmem:[%s2929_s6 + $0x18] sm:$0xff] }
 0x390   :  { %v1433_v32 = vpack.c.bf16 %v1428_v28, %v1427_v26  ;;  %v1429_v47 = vld [vmem:[%s2929_s6 + $0x30] sm:$0xff]  ;;  %v1430_v48 = vld [vmem:[%s2929_s6 + $0x38] sm:$0xff]  ;;  %v1432_v49 = vpack.c.bf16 %v1426_v45, %v1425_v42 }
 0x391   :  { %1861 = vmatprep.mubr.bf16.mxu0 %v1431_v27  ;;  %v1434_v50 = vpack.c.bf16 %v1430_v48, %v1429_v47 }
 0x392   :  { %1865 = vmatprep.mubr.bf16.mxu1 %v1433_v32  ;;  %1862 = vmatmul.mubr.bf16.vlgmr.msra.gmra.mxu0 %v1432_v49 }
 0x393   :  { %1866 = vmatmul.mubr.bf16.vlgmr.msra.gmra.mxu1 %v1434_v50 }
 0x452   :  { %v1863_v52 = vpop.f32.mrf.mxu0 }
 0x453   :  { %v1867_v53 = vpop.f32.mrf.mxu1  ;;  %v1549_v54 = vadd.f32 %v1863_v52, %v1815_v51 }
 0x454   :  { %v1565_v55 = vadd.f32 %v1867_v53, %v1815_v51  ;;  %v1540_v56 = vpop.f32.mrf.mxu0 }
 0x455   :  { %v1556_v57 = vpop.f32.mrf.mxu1  ;;  %v1826_v58 = vmul.f32 -1.442695, %v1549_v54  ;;  %v1541_v60 = vadd.f32 %v1815_v51, %v1540_v56 }
 0x456   :  { %v1830_v59 = vmul.f32 -1.442695, %v1565_v55  ;;  %v1557_v61 = vadd.f32 %v1815_v51, %v1556_v57  ;;  %v1864_v62 = vpop.f32.mrf.mxu0 }
 0x457   :  { %v1868_v63 = vpop.f32.mrf.mxu1  ;;  %1957 = vpow2.f32 %v1826_v58  ;;  %v1824_v39 = vmul.f32 -1.442695, %v1541_v60  ;;  %v1552_v38 = vadd.f32 %v1864_v62, %v1815_v51 }
 0x458   :  { %v1828_v34 = vmul.f32 -1.442695, %v1557_v61  ;;  %1959 = vpow2.f32 %v1830_v59  ;;  %v1568_v31 = vadd.f32 %v1868_v63, %v1815_v51  ;;  %v1543_v44 = vpop.f32.mrf.mxu0 }
 0x459   :  { %v1559_v43 = vpop.f32.mrf.mxu1  ;;  %1961 = vpow2.f32 %v1824_v39  ;;  %v1827_v33 = vmul.f32 -1.442695, %v1552_v38  ;;  %v1544_v40 = vadd.f32 %v1815_v51, %v1543_v44 }
 0x45a   :  { %v1560_v29 = vadd.f32 %v1815_v51, %v1559_v43  ;;  %1963 = vpow2.f32 %v1828_v34  ;;  %v1831_v30 = vmul.f32 -1.442695, %v1568_v31 }
 0x45b   :  { %1965 = vpow2.f32 %v1827_v33  ;;  %v1825_v46 = vmul.f32 -1.442695, %v1544_v40 }
 0x45c   :  { %v1829_v18 = vmul.f32 -1.442695, %v1560_v29  ;;  %1967 = vpow2.f32 %v1831_v30 }
 0x45d   :  { %1969 = vpow2.f32 %v1825_v46 }
 0x45e   :  { %1971 = vpow2.f32 %v1829_v18 }
 0x464   :  { %v1958_v20 = vpop.eup %1957 }
 0x465   :  { %v1960_v21 = vpop.eup %1959  ;;  %v1597_v23 = vadd.f32 1.0, %v1958_v20 }
 0x466   :  { %v1962_v24 = vpop.eup %1961  ;;  %v1601_v17 = vadd.f32 1.0, %v1960_v21 }
 0x467   :  { %v1964_v22 = vpop.eup %1963  ;;  %1973 = vrcp.f32 %v1597_v23  ;;  %v1595_v6 = vadd.f32 1.0, %v1962_v24 }
 0x468   :  { %v1966_v3 = vpop.eup %1965  ;;  %1975 = vrcp.f32 %v1601_v17  ;;  %v1599_v14 = vadd.f32 1.0, %v1964_v22 }
 0x469   :  { %v1968_v1 = vpop.eup %1967  ;;  %1977 = vrcp.f32 %v1595_v6  ;;  %v1598_v12 = vadd.f32 1.0, %v1966_v3 }
 0x46a   :  { %v1970_v9 = vpop.eup %1969  ;;  %1979 = vrcp.f32 %v1599_v14  ;;  %v1602_v11 = vadd.f32 1.0, %v1968_v1 }
 0x46b   :  { %v1972_v13 = vpop.eup %1971  ;;  %1981 = vrcp.f32 %v1598_v12  ;;  %v1596_v15 = vadd.f32 1.0, %v1970_v9 }
 0x46c   :  { %1983 = vrcp.f32 %v1602_v11  ;;  %v1600_v16 = vadd.f32 1.0, %v1972_v13 }
 0x46d   :  { %1985 = vrcp.f32 %v1596_v15 }
 0x46e   :  { %1987 = vrcp.f32 %v1600_v16 }
 0x474   :  { %v1974_v8 = vpop.eup %1973 }
 0x475   :  { %v1976_v7 = vpop.eup %1975  ;;  %1621 = vst [vmem:[%s2929_s6 + $0x10] sm:$0xff] %v1974_v8 }
 0x476   :  { %v1978_v4 = vpop.eup %1977  ;;  %1625 = vst [vmem:[%s2929_s6 + $0x30] sm:$0xff] %v1976_v7 }
 0x477   :  { %v1980_v2 = vpop.eup %1979  ;;  %1619 = vst [vmem:[%s2929_s6] sm:$0xff] %v1978_v4 }
 0x478   :  { %v1982_v19 = vpop.eup %1981  ;;  %1623 = vst [vmem:[%s2929_s6 + $0x20] sm:$0xff] %v1980_v2 }
 0x479   :  { %v1984_v0 = vpop.eup %1983  ;;  %1622 = vst [vmem:[%s2929_s6 + $0x18] sm:$0xff] %v1982_v19 }
 0x47a   :  { %v1986_v5 = vpop.eup %1985  ;;  %1626 = vst [vmem:[%s2929_s6 + $0x38] sm:$0xff] %v1984_v0 }
 0x47b   :  { %v1988_v10 = vpop.eup %1987  ;;  %1620 = vst [vmem:[%s2929_s6 + $0x8] sm:$0xff] %v1986_v5 }
 0x47c   :  { %1624 = vst [vmem:[%s2929_s6 + $0x28] sm:$0xff] %v1988_v10 }
 0x47d   :  { %1631 = vsyncpa [#allocation5], 1 }
 0x47e   :  { %1632 = vsyncpa [#allocation7], 1 }

</bundles_post_ra>
